<compile_context>
chip_gen: v7x
topology: tpu7x:2x2x1
jax: 0.10.0
libtpu: 0.0.40
codegen_flags: <defaults>
</compile_context>

<pallas_src>
import functools

import jax
import jax.numpy as jnp
import numpy as np
from jax.experimental import pallas as pl
from jax.experimental.pallas import tpu as pltpu


def _round_up(x, m):
    return (x + m - 1) // m * m


def _lstm_kernel(x_ref, wih_ref, whh_ref, b_ref, wout_ref, bout_ref,
                 out_ref, xw_ref, h_all_ref, *, T, B, H):
    """Whole sequence in a single invocation (padded shapes).

    x_ref    : (T*B, H)   time-major embedded inputs (B, H padded)
    wih_ref  : (H, 4H)    W_ih^T, gate order i,f,g,o, zero-padded per gate slab
    whh_ref  : (H, 4H)    W_hh^T, zero-padded per gate slab
    b_ref    : (1, 4H)    b_ih + b_hh, zero-padded
    wout_ref : (H, P)     Linear weight^T, zero-padded
    bout_ref : (1, P)     Linear bias, zero-padded
    out_ref  : (T*B, P)   projected outputs (lane-dense, P padded to 128)
    xw_ref   : (T*B, 4H)  scratch: hoisted input projection
    h_all_ref: (T*B, H)   scratch: all hidden states
    """
    # (1) Hoisted input projection: one big MXU matmul for every timestep at once.
    xw_ref[...] = (
        jnp.dot(x_ref[...], wih_ref[...], preferred_element_type=jnp.float32)
        + b_ref[...])

    # (2) Serial recurrence.  Per step: one (B,H)x(H,4H) matmul + elementwise gates.
    def step(t, carry):
        h_prev, c_prev = carry
        row = pl.multiple_of(t * B, B)
        gates = (xw_ref[pl.ds(row, B), :]
                 + jnp.dot(h_prev, whh_ref[...],
                           preferred_element_type=jnp.float32))
        # H is padded to 128, so every gate slab is a full 128-lane group.
        i_g = jax.nn.sigmoid(gates[:, 0 * H:1 * H])
        f_g = jax.nn.sigmoid(gates[:, 1 * H:2 * H])
        g_g = jnp.tanh(gates[:, 2 * H:3 * H])
        o_g = jax.nn.sigmoid(gates[:, 3 * H:4 * H])
        c_new = f_g * c_prev + i_g * g_g          # f32 cell state
        h_new = o_g * jnp.tanh(c_new)
        h_all_ref[pl.ds(row, B), :] = h_new
        return h_new, c_new

    zeros = jnp.zeros((B, H), jnp.float32)
    jax.lax.fori_loop(0, T, step, (zeros, zeros), unroll=True)

    # (3) Hoisted output Linear: one (T*B, H)x(H, P) matmul + bias, lane-dense store.
    out_ref[...] = (
        jnp.dot(h_all_ref[...], wout_ref[...], preferred_element_type=jnp.float32)
        + bout_ref[...]).astype(out_ref.dtype)


@jax.jit
def my_lstm_forward(x_ids, emb_table, w_ih_t, w_hh_t, b_gates, w_out_t, b_out):
    """x_ids: int32 [B, T]  ->  out: float32 [B, T, P] (batch_first, like MyLSTM)."""
    B, T = x_ids.shape
    V, H = emb_table.shape
    P = w_out_t.shape[1]

    # Pad to vreg-friendly shapes: B -> 8 (f32 sublanes), H/P -> 128 (lanes).
    Bp = _round_up(max(B, 8), 8)
    Hp = _round_up(max(H, 128), 128)
    Pp = _round_up(max(P, 128), 128)

    # Zero-pad parameters per gate slab so gate boundaries land on 128-lane groups.
    emb_p = jnp.zeros((V, Hp), jnp.float32).at[:, :H].set(emb_table)
    wih_p = (jnp.zeros((Hp, 4, Hp), jnp.float32)
             .at[:H, :, :H].set(w_ih_t.reshape(H, 4, H))
             .reshape(Hp, 4 * Hp))
    whh_p = (jnp.zeros((Hp, 4, Hp), jnp.float32)
             .at[:H, :, :H].set(w_hh_t.reshape(H, 4, H))
             .reshape(Hp, 4 * Hp))
    b_p = (jnp.zeros((4, Hp), jnp.float32)
           .at[:, :H].set(b_gates.reshape(4, H))
           .reshape(1, 4 * Hp))
    wout_p = jnp.zeros((Hp, Pp), jnp.float32).at[:H, :P].set(w_out_t)
    bout_p = jnp.zeros((1, Pp), jnp.float32).at[:, :P].set(b_out)

    # Embedding gather directly time-major (padding_idx=0 handled by zeroed row 0).
    x_tm = jnp.take(emb_p, x_ids.T, axis=0)               # [T, B, Hp]
    x_tm = jnp.pad(x_tm, ((0, 0), (0, Bp - B), (0, 0)))   # [T, Bp, Hp]
    x_flat = x_tm.reshape(T * Bp, Hp)

    kernel = functools.partial(_lstm_kernel, T=T, B=Bp, H=Hp)

    out_flat = pl.pallas_call(
        kernel,
        out_shape=jax.ShapeDtypeStruct((T * Bp, Pp), jnp.float32),
        grid_spec=pltpu.PrefetchScalarGridSpec(
            num_scalar_prefetch=0,
            grid=(1,),                       # single invocation; loop over T in-kernel
            in_specs=[
                pl.BlockSpec((T * Bp, Hp), lambda i: (0, 0)),
                pl.BlockSpec((Hp, 4 * Hp), lambda i: (0, 0)),
                pl.BlockSpec((Hp, 4 * Hp), lambda i: (0, 0)),
                pl.BlockSpec((1, 4 * Hp), lambda i: (0, 0)),
                pl.BlockSpec((Hp, Pp), lambda i: (0, 0)),
                pl.BlockSpec((1, Pp), lambda i: (0, 0)),
            ],
            out_specs=pl.BlockSpec((T * Bp, Pp), lambda i: (0, 0)),
            scratch_shapes=[
                pltpu.VMEM((T * Bp, 4 * Hp), jnp.float32),   # xW (hoisted input proj)
                pltpu.VMEM((T * Bp, Hp), jnp.float32),       # all hidden states
            ],
        ),
        compiler_params=pltpu.CompilerParams(
            dimension_semantics=("arbitrary",)),
    )(x_flat, wih_p, whh_p, b_p, wout_p, bout_p)

    out = out_flat.reshape(T, Bp, Pp)[:, :B, :P]           # strip padding -> [T, B, P]
    return jnp.transpose(out, (1, 0, 2))                   # [B, T, P] (batch_first)


def _reference_forward(x_ids, emb_table, w_ih_t, w_hh_t, b_gates, w_out_t, b_out):
    """Pure-JAX reference (same math, unpadded) for a correctness check."""
    B, T = x_ids.shape
    H = emb_table.shape[1]
    x_emb = jnp.take(emb_table, x_ids, axis=0)             # [B, T, H]

    def step(carry, x_t):
        h, c = carry
        gates = x_t @ w_ih_t + h @ w_hh_t + b_gates[0]
        i = jax.nn.sigmoid(gates[:, 0 * H:1 * H])
        f = jax.nn.sigmoid(gates[:, 1 * H:2 * H])
        g = jnp.tanh(gates[:, 2 * H:3 * H])
        o = jax.nn.sigmoid(gates[:, 3 * H:4 * H])
        c = f * c + i * g
        h = o * jnp.tanh(c)
        return (h, c), h

    init = (jnp.zeros((B, H), jnp.float32), jnp.zeros((B, H), jnp.float32))
    _, hs = jax.lax.scan(step, init, jnp.transpose(x_emb, (1, 0, 2)))  # [T, B, H]
    lo = jnp.transpose(hs, (1, 0, 2))                                  # [B, T, H]
    return lo @ w_out_t + b_out[0]


if __name__ == "__main__":
    # Module hyper-parameters (small, consistent with MyLSTM(vocsize, posn, hdim)).
    VOCSIZE, POSN, HDIM = 50, 10, 32
    B, T = 2, 8

    key = jax.random.PRNGKey(0)
    k_emb, k_ih, k_hh, k_bih, k_bhh, k_w, k_b, k_x = jax.random.split(key, 8)

    bound = 1.0 / np.sqrt(HDIM)

    # nn.Embedding(vocsize, hdim, padding_idx=0): row 0 zeroed.
    emb_table = jax.random.normal(k_emb, (VOCSIZE, HDIM), jnp.float32)
    emb_table = emb_table.at[0].set(0.0)

    # nn.LSTM(hdim, hdim): weight_ih/weight_hh are (4H, H); we store transposes.
    w_ih_t = jax.random.uniform(k_ih, (HDIM, 4 * HDIM), jnp.float32, -bound, bound)
    w_hh_t = jax.random.uniform(k_hh, (HDIM, 4 * HDIM), jnp.float32, -bound, bound)
    b_ih = jax.random.uniform(k_bih, (4 * HDIM,), jnp.float32, -bound, bound)
    b_hh = jax.random.uniform(k_bhh, (4 * HDIM,), jnp.float32, -bound, bound)
    b_gates = (b_ih + b_hh).reshape(1, 4 * HDIM)

    # nn.Linear(hdim, posn): weight is (posn, hdim); we store its transpose.
    w_out_t = jax.random.uniform(k_w, (HDIM, POSN), jnp.float32, -bound, bound)
    b_out = jax.random.uniform(k_b, (POSN,), jnp.float32, -bound, bound).reshape(1, POSN)

    # Integer token ids, including some padding (0) tokens.
    x_ids = jax.random.randint(k_x, (B, T), 0, VOCSIZE, dtype=jnp.int32)

    out = my_lstm_forward(x_ids, emb_table, w_ih_t, w_hh_t, b_gates, w_out_t, b_out)
    out = jax.block_until_ready(out)

    ref = _reference_forward(x_ids, emb_table, w_ih_t, w_hh_t, b_gates, w_out_t, b_out)
    assert out.shape == (B, T, POSN)
    np.testing.assert_allclose(np.asarray(out), np.asarray(ref), rtol=1e-5, atol=1e-5)

    print("KERNEL_OK")
</pallas_src>

<mosaic_0001>
module attributes {stable_mosaic.version = 11 : i64} {
  func.func @_lstm_kernel(%arg0: i32, %arg1: memref<64x128xf32, #tpu.memory_space<vmem>>, %arg2: memref<128x512xf32, #tpu.memory_space<vmem>>, %arg3: memref<128x512xf32, #tpu.memory_space<vmem>>, %arg4: memref<1x512xf32, #tpu.memory_space<vmem>>, %arg5: memref<128x128xf32, #tpu.memory_space<vmem>>, %arg6: memref<1x128xf32, #tpu.memory_space<vmem>>, %arg7: memref<64x128xf32, #tpu.memory_space<vmem>>, %arg8: memref<64x512xf32, #tpu.memory_space<vmem>>, %arg9: memref<64x128xf32, #tpu.memory_space<vmem>>) attributes {dimension_semantics = [#tpu.dimension_semantics<arbitrary>], iteration_bounds = array<i64: 1>, scalar_prefetch = 0 : i64, scratch_operands = 2 : i64, tpu.core_type = #tpu.core_type<tc>, window_params = [{pipeline_mode = #tpu.pipeline_mode<synchronous>, transform_indices = @transform_0, window_bounds = array<i64: 64, 128>}, {pipeline_mode = #tpu.pipeline_mode<synchronous>, transform_indices = @transform_1, window_bounds = array<i64: 128, 512>}, {pipeline_mode = #tpu.pipeline_mode<synchronous>, transform_indices = @transform_2, window_bounds = array<i64: 128, 512>}, {pipeline_mode = #tpu.pipeline_mode<synchronous>, transform_indices = @transform_3, window_bounds = array<i64: 1, 512>}, {pipeline_mode = #tpu.pipeline_mode<synchronous>, transform_indices = @transform_4, window_bounds = array<i64: 128, 128>}, {pipeline_mode = #tpu.pipeline_mode<synchronous>, transform_indices = @transform_5, window_bounds = array<i64: 1, 128>}, {pipeline_mode = #tpu.pipeline_mode<synchronous>, transform_indices = @transform_6, window_bounds = array<i64: 64, 128>}]} {
    %c0 = arith.constant 0 : index
    %c0_0 = arith.constant 0 : index
    %0 = vector.load %arg1[%c0, %c0_0] : memref<64x128xf32, #tpu.memory_space<vmem>>, vector<64x128xf32>
    %c0_1 = arith.constant 0 : index
    %c0_2 = arith.constant 0 : index
    %1 = vector.load %arg2[%c0_1, %c0_2] : memref<128x512xf32, #tpu.memory_space<vmem>>, vector<128x512xf32>
    %cst = arith.constant dense<0.000000e+00> : vector<64x512xf32>
    %2 = tpu.matmul %0, %1, %cst {dimension_numbers = #tpu.dot_dimension_numbers<[1], [0], [0], [1], [0, 0, 1, 1], [], []>} : vector<64x128xf32>, vector<128x512xf32>, vector<64x512xf32> -> vector<64x512xf32>
    %c0_3 = arith.constant 0 : index
    %c0_4 = arith.constant 0 : index
    %3 = vector.load %arg4[%c0_3, %c0_4] : memref<1x512xf32, #tpu.memory_space<vmem>>, vector<1x512xf32>
    %4 = vector.broadcast %3 : vector<1x512xf32> to vector<64x512xf32>
    %5 = arith.addf %2, %4 : vector<64x512xf32>
    %c0_5 = arith.constant 0 : index
    %c0_6 = arith.constant 0 : index
    %6 = vector.load %arg8[%c0_5, %c0_6] : memref<64x512xf32, #tpu.memory_space<vmem>>, vector<64x512xf32>
    tpu.vector_store %arg8[%c0_5, %c0_6], %5 {strides = array<i32>} : memref<64x512xf32, #tpu.memory_space<vmem>>, vector<64x512xf32>,
    %cst_7 = arith.constant 0.000000e+00 : f32
    %7 = vector.broadcast %cst_7 : f32 to vector<8x128xf32>
    %c0_i32 = arith.constant 0 : i32
    %c8_i32 = arith.constant 8 : i32
    %8 = arith.muli %c0_i32, %c8_i32 : i32
    %9 = tpu.assume_multiple %8, 8 : i32
    %10 = arith.index_cast %9 : i32 to index
    %c0_8 = arith.constant 0 : index
    %11 = vector.load %arg8[%10, %c0_8] : memref<64x512xf32, #tpu.memory_space<vmem>>, vector<8x512xf32>
    %c0_9 = arith.constant 0 : index
    %c0_10 = arith.constant 0 : index
    %12 = vector.load %arg3[%c0_9, %c0_10] : memref<128x512xf32, #tpu.memory_space<vmem>>, vector<128x512xf32>
    %cst_11 = arith.constant dense<0.000000e+00> : vector<8x512xf32>
    %13 = tpu.matmul %7, %12, %cst_11 {dimension_numbers = #tpu.dot_dimension_numbers<[1], [0], [0], [1], [0, 0, 1, 1], [], []>} : vector<8x128xf32>, vector<128x512xf32>, vector<8x512xf32> -> vector<8x512xf32>
    %14 = arith.addf %11, %13 : vector<8x512xf32>
    %15 = vector.extract_strided_slice %14 {offsets = [0, 0], sizes = [8, 128], strides = [1, 1]} : vector<8x512xf32> to vector<8x128xf32>
    %16 = arith.negf %15 : vector<8x128xf32>
    %17 = math.exp %16 : vector<8x128xf32>
    %cst_12 = arith.constant 1.000000e+00 : f32
    %18 = vector.broadcast %cst_12 : f32 to vector<8x128xf32>
    %19 = arith.addf %18, %17 : vector<8x128xf32>
    %20 = arith.divf %18, %19 : vector<8x128xf32>
    %21 = vector.extract_strided_slice %14 {offsets = [0, 128], sizes = [8, 128], strides = [1, 1]} : vector<8x512xf32> to vector<8x128xf32>
    %22 = arith.negf %21 : vector<8x128xf32>
    %23 = math.exp %22 : vector<8x128xf32>
    %cst_13 = arith.constant 1.000000e+00 : f32
    %24 = vector.broadcast %cst_13 : f32 to vector<8x128xf32>
    %25 = arith.addf %24, %23 : vector<8x128xf32>
    %26 = arith.divf %24, %25 : vector<8x128xf32>
    %27 = vector.extract_strided_slice %14 {offsets = [0, 256], sizes = [8, 128], strides = [1, 1]} : vector<8x512xf32> to vector<8x128xf32>
    %28 = math.tanh %27 : vector<8x128xf32>
    %29 = vector.extract_strided_slice %14 {offsets = [0, 384], sizes = [8, 128], strides = [1, 1]} : vector<8x512xf32> to vector<8x128xf32>
    %30 = arith.negf %29 : vector<8x128xf32>
    %31 = math.exp %30 : vector<8x128xf32>
    %cst_14 = arith.constant 1.000000e+00 : f32
    %32 = vector.broadcast %cst_14 : f32 to vector<8x128xf32>
    %33 = arith.addf %32, %31 : vector<8x128xf32>
    %34 = arith.divf %32, %33 : vector<8x128xf32>
    %35 = arith.mulf %26, %7 : vector<8x128xf32>
    %36 = arith.mulf %20, %28 : vector<8x128xf32>
    %37 = arith.addf %35, %36 : vector<8x128xf32>
    %38 = math.tanh %37 : vector<8x128xf32>
    %39 = arith.mulf %34, %38 : vector<8x128xf32>
    %40 = arith.index_cast %9 : i32 to index
    %c0_15 = arith.constant 0 : index
    %41 = vector.load %arg9[%40, %c0_15] : memref<64x128xf32, #tpu.memory_space<vmem>>, vector<8x128xf32>
    tpu.vector_store %arg9[%40, %c0_15], %39 {strides = array<i32>} : memref<64x128xf32, #tpu.memory_space<vmem>>, vector<8x128xf32>,
    %c1_i32 = arith.constant 1 : i32
    %c8_i32_16 = arith.constant 8 : i32
    %42 = arith.muli %c1_i32, %c8_i32_16 : i32
    %43 = tpu.assume_multiple %42, 8 : i32
    %44 = arith.index_cast %43 : i32 to index
    %c0_17 = arith.constant 0 : index
    %45 = vector.load %arg8[%44, %c0_17] : memref<64x512xf32, #tpu.memory_space<vmem>>, vector<8x512xf32>
    %c0_18 = arith.constant 0 : index
    %c0_19 = arith.constant 0 : index
    %46 = vector.load %arg3[%c0_18, %c0_19] : memref<128x512xf32, #tpu.memory_space<vmem>>, vector<128x512xf32>
    %cst_20 = arith.constant dense<0.000000e+00> : vector<8x512xf32>
    %47 = tpu.matmul %39, %46, %cst_20 {dimension_numbers = #tpu.dot_dimension_numbers<[1], [0], [0], [1], [0, 0, 1, 1], [], []>} : vector<8x128xf32>, vector<128x512xf32>, vector<8x512xf32> -> vector<8x512xf32>
    %48 = arith.addf %45, %47 : vector<8x512xf32>
    %49 = vector.extract_strided_slice %48 {offsets = [0, 0], sizes = [8, 128], strides = [1, 1]} : vector<8x512xf32> to vector<8x128xf32>
    %50 = arith.negf %49 : vector<8x128xf32>
    %51 = math.exp %50 : vector<8x128xf32>
    %cst_21 = arith.constant 1.000000e+00 : f32
    %52 = vector.broadcast %cst_21 : f32 to vector<8x128xf32>
    %53 = arith.addf %52, %51 : vector<8x128xf32>
    %54 = arith.divf %52, %53 : vector<8x128xf32>
    %55 = vector.extract_strided_slice %48 {offsets = [0, 128], sizes = [8, 128], strides = [1, 1]} : vector<8x512xf32> to vector<8x128xf32>
    %56 = arith.negf %55 : vector<8x128xf32>
    %57 = math.exp %56 : vector<8x128xf32>
    %cst_22 = arith.constant 1.000000e+00 : f32
    %58 = vector.broadcast %cst_22 : f32 to vector<8x128xf32>
    %59 = arith.addf %58, %57 : vector<8x128xf32>
    %60 = arith.divf %58, %59 : vector<8x128xf32>
    %61 = vector.extract_strided_slice %48 {offsets = [0, 256], sizes = [8, 128], strides = [1, 1]} : vector<8x512xf32> to vector<8x128xf32>
    %62 = math.tanh %61 : vector<8x128xf32>
    %63 = vector.extract_strided_slice %48 {offsets = [0, 384], sizes = [8, 128], strides = [1, 1]} : vector<8x512xf32> to vector<8x128xf32>
    %64 = arith.negf %63 : vector<8x128xf32>
    %65 = math.exp %64 : vector<8x128xf32>
    %cst_23 = arith.constant 1.000000e+00 : f32
    %66 = vector.broadcast %cst_23 : f32 to vector<8x128xf32>
    %67 = arith.addf %66, %65 : vector<8x128xf32>
    %68 = arith.divf %66, %67 : vector<8x128xf32>
    %69 = arith.mulf %60, %37 : vector<8x128xf32>
    %70 = arith.mulf %54, %62 : vector<8x128xf32>
    %71 = arith.addf %69, %70 : vector<8x128xf32>
    %72 = math.tanh %71 : vector<8x128xf32>
    %73 = arith.mulf %68, %72 : vector<8x128xf32>
    %74 = arith.index_cast %43 : i32 to index
    %c0_24 = arith.constant 0 : index
    %75 = vector.load %arg9[%74, %c0_24] : memref<64x128xf32, #tpu.memory_space<vmem>>, vector<8x128xf32>
    tpu.vector_store %arg9[%74, %c0_24], %73 {strides = array<i32>} : memref<64x128xf32, #tpu.memory_space<vmem>>, vector<8x128xf32>,
    %c2_i32 = arith.constant 2 : i32
    %c8_i32_25 = arith.constant 8 : i32
    %76 = arith.muli %c2_i32, %c8_i32_25 : i32
    %77 = tpu.assume_multiple %76, 8 : i32
    %78 = arith.index_cast %77 : i32 to index
    %c0_26 = arith.constant 0 : index
    %79 = vector.load %arg8[%78, %c0_26] : memref<64x512xf32, #tpu.memory_space<vmem>>, vector<8x512xf32>
    %c0_27 = arith.constant 0 : index
    %c0_28 = arith.constant 0 : index
    %80 = vector.load %arg3[%c0_27, %c0_28] : memref<128x512xf32, #tpu.memory_space<vmem>>, vector<128x512xf32>
    %cst_29 = arith.constant dense<0.000000e+00> : vector<8x512xf32>
    %81 = tpu.matmul %73, %80, %cst_29 {dimension_numbers = #tpu.dot_dimension_numbers<[1], [0], [0], [1], [0, 0, 1, 1], [], []>} : vector<8x128xf32>, vector<128x512xf32>, vector<8x512xf32> -> vector<8x512xf32>
    %82 = arith.addf %79, %81 : vector<8x512xf32>
    %83 = vector.extract_strided_slice %82 {offsets = [0, 0], sizes = [8, 128], strides = [1, 1]} : vector<8x512xf32> to vector<8x128xf32>
    %84 = arith.negf %83 : vector<8x128xf32>
    %85 = math.exp %84 : vector<8x128xf32>
    %cst_30 = arith.constant 1.000000e+00 : f32
    %86 = vector.broadcast %cst_30 : f32 to vector<8x128xf32>
    %87 = arith.addf %86, %85 : vector<8x128xf32>
    %88 = arith.divf %86, %87 : vector<8x128xf32>
    %89 = vector.extract_strided_slice %82 {offsets = [0, 128], sizes = [8, 128], strides = [1, 1]} : vector<8x512xf32> to vector<8x128xf32>
    %90 = arith.negf %89 : vector<8x128xf32>
    %91 = math.exp %90 : vector<8x128xf32>
    %cst_31 = arith.constant 1.000000e+00 : f32
    %92 = vector.broadcast %cst_31 : f32 to vector<8x128xf32>
    %93 = arith.addf %92, %91 : vector<8x128xf32>
    %94 = arith.divf %92, %93 : vector<8x128xf32>
    %95 = vector.extract_strided_slice %82 {offsets = [0, 256], sizes = [8, 128], strides = [1, 1]} : vector<8x512xf32> to vector<8x128xf32>
    %96 = math.tanh %95 : vector<8x128xf32>
    %97 = vector.extract_strided_slice %82 {offsets = [0, 384], sizes = [8, 128], strides = [1, 1]} : vector<8x512xf32> to vector<8x128xf32>
    %98 = arith.negf %97 : vector<8x128xf32>
    %99 = math.exp %98 : vector<8x128xf32>
    %cst_32 = arith.constant 1.000000e+00 : f32
    %100 = vector.broadcast %cst_32 : f32 to vector<8x128xf32>
    %101 = arith.addf %100, %99 : vector<8x128xf32>
    %102 = arith.divf %100, %101 : vector<8x128xf32>
    %103 = arith.mulf %94, %71 : vector<8x128xf32>
    %104 = arith.mulf %88, %96 : vector<8x128xf32>
    %105 = arith.addf %103, %104 : vector<8x128xf32>
    %106 = math.tanh %105 : vector<8x128xf32>
    %107 = arith.mulf %102, %106 : vector<8x128xf32>
    %108 = arith.index_cast %77 : i32 to index
    %c0_33 = arith.constant 0 : index
    %109 = vector.load %arg9[%108, %c0_33] : memref<64x128xf32, #tpu.memory_space<vmem>>, vector<8x128xf32>
    tpu.vector_store %arg9[%108, %c0_33], %107 {strides = array<i32>} : memref<64x128xf32, #tpu.memory_space<vmem>>, vector<8x128xf32>,
    %c3_i32 = arith.constant 3 : i32
    %c8_i32_34 = arith.constant 8 : i32
    %110 = arith.muli %c3_i32, %c8_i32_34 : i32
    %111 = tpu.assume_multiple %110, 8 : i32
    %112 = arith.index_cast %111 : i32 to index
    %c0_35 = arith.constant 0 : index
    %113 = vector.load %arg8[%112, %c0_35] : memref<64x512xf32, #tpu.memory_space<vmem>>, vector<8x512xf32>
    %c0_36 = arith.constant 0 : index
    %c0_37 = arith.constant 0 : index
    %114 = vector.load %arg3[%c0_36, %c0_37] : memref<128x512xf32, #tpu.memory_space<vmem>>, vector<128x512xf32>
    %cst_38 = arith.constant dense<0.000000e+00> : vector<8x512xf32>
    %115 = tpu.matmul %107, %114, %cst_38 {dimension_numbers = #tpu.dot_dimension_numbers<[1], [0], [0], [1], [0, 0, 1, 1], [], []>} : vector<8x128xf32>, vector<128x512xf32>, vector<8x512xf32> -> vector<8x512xf32>
    %116 = arith.addf %113, %115 : vector<8x512xf32>
    %117 = vector.extract_strided_slice %116 {offsets = [0, 0], sizes = [8, 128], strides = [1, 1]} : vector<8x512xf32> to vector<8x128xf32>
    %118 = arith.negf %117 : vector<8x128xf32>
    %119 = math.exp %118 : vector<8x128xf32>
    %cst_39 = arith.constant 1.000000e+00 : f32
    %120 = vector.broadcast %cst_39 : f32 to vector<8x128xf32>
    %121 = arith.addf %120, %119 : vector<8x128xf32>
    %122 = arith.divf %120, %121 : vector<8x128xf32>
    %123 = vector.extract_strided_slice %116 {offsets = [0, 128], sizes = [8, 128], strides = [1, 1]} : vector<8x512xf32> to vector<8x128xf32>
    %124 = arith.negf %123 : vector<8x128xf32>
    %125 = math.exp %124 : vector<8x128xf32>
    %cst_40 = arith.constant 1.000000e+00 : f32
    %126 = vector.broadcast %cst_40 : f32 to vector<8x128xf32>
    %127 = arith.addf %126, %125 : vector<8x128xf32>
    %128 = arith.divf %126, %127 : vector<8x128xf32>
    %129 = vector.extract_strided_slice %116 {offsets = [0, 256], sizes = [8, 128], strides = [1, 1]} : vector<8x512xf32> to vector<8x128xf32>
    %130 = math.tanh %129 : vector<8x128xf32>
    %131 = vector.extract_strided_slice %116 {offsets = [0, 384], sizes = [8, 128], strides = [1, 1]} : vector<8x512xf32> to vector<8x128xf32>
    %132 = arith.negf %131 : vector<8x128xf32>
    %133 = math.exp %132 : vector<8x128xf32>
    %cst_41 = arith.constant 1.000000e+00 : f32
    %134 = vector.broadcast %cst_41 : f32 to vector<8x128xf32>
    %135 = arith.addf %134, %133 : vector<8x128xf32>
    %136 = arith.divf %134, %135 : vector<8x128xf32>
    %137 = arith.mulf %128, %105 : vector<8x128xf32>
    %138 = arith.mulf %122, %130 : vector<8x128xf32>
    %139 = arith.addf %137, %138 : vector<8x128xf32>
    %140 = math.tanh %139 : vector<8x128xf32>
    %141 = arith.mulf %136, %140 : vector<8x128xf32>
    %142 = arith.index_cast %111 : i32 to index
    %c0_42 = arith.constant 0 : index
    %143 = vector.load %arg9[%142, %c0_42] : memref<64x128xf32, #tpu.memory_space<vmem>>, vector<8x128xf32>
    tpu.vector_store %arg9[%142, %c0_42], %141 {strides = array<i32>} : memref<64x128xf32, #tpu.memory_space<vmem>>, vector<8x128xf32>,
    %c4_i32 = arith.constant 4 : i32
    %c8_i32_43 = arith.constant 8 : i32
    %144 = arith.muli %c4_i32, %c8_i32_43 : i32
    %145 = tpu.assume_multiple %144, 8 : i32
    %146 = arith.index_cast %145 : i32 to index
    %c0_44 = arith.constant 0 : index
    %147 = vector.load %arg8[%146, %c0_44] : memref<64x512xf32, #tpu.memory_space<vmem>>, vector<8x512xf32>
    %c0_45 = arith.constant 0 : index
    %c0_46 = arith.constant 0 : index
    %148 = vector.load %arg3[%c0_45, %c0_46] : memref<128x512xf32, #tpu.memory_space<vmem>>, vector<128x512xf32>
    %cst_47 = arith.constant dense<0.000000e+00> : vector<8x512xf32>
    %149 = tpu.matmul %141, %148, %cst_47 {dimension_numbers = #tpu.dot_dimension_numbers<[1], [0], [0], [1], [0, 0, 1, 1], [], []>} : vector<8x128xf32>, vector<128x512xf32>, vector<8x512xf32> -> vector<8x512xf32>
    %150 = arith.addf %147, %149 : vector<8x512xf32>
    %151 = vector.extract_strided_slice %150 {offsets = [0, 0], sizes = [8, 128], strides = [1, 1]} : vector<8x512xf32> to vector<8x128xf32>
    %152 = arith.negf %151 : vector<8x128xf32>
    %153 = math.exp %152 : vector<8x128xf32>
    %cst_48 = arith.constant 1.000000e+00 : f32
    %154 = vector.broadcast %cst_48 : f32 to vector<8x128xf32>
    %155 = arith.addf %154, %153 : vector<8x128xf32>
    %156 = arith.divf %154, %155 : vector<8x128xf32>
    %157 = vector.extract_strided_slice %150 {offsets = [0, 128], sizes = [8, 128], strides = [1, 1]} : vector<8x512xf32> to vector<8x128xf32>
    %158 = arith.negf %157 : vector<8x128xf32>
    %159 = math.exp %158 : vector<8x128xf32>
    %cst_49 = arith.constant 1.000000e+00 : f32
    %160 = vector.broadcast %cst_49 : f32 to vector<8x128xf32>
    %161 = arith.addf %160, %159 : vector<8x128xf32>
    %162 = arith.divf %160, %161 : vector<8x128xf32>
    %163 = vector.extract_strided_slice %150 {offsets = [0, 256], sizes = [8, 128], strides = [1, 1]} : vector<8x512xf32> to vector<8x128xf32>
    %164 = math.tanh %163 : vector<8x128xf32>
    %165 = vector.extract_strided_slice %150 {offsets = [0, 384], sizes = [8, 128], strides = [1, 1]} : vector<8x512xf32> to vector<8x128xf32>
    %166 = arith.negf %165 : vector<8x128xf32>
    %167 = math.exp %166 : vector<8x128xf32>
    %cst_50 = arith.constant 1.000000e+00 : f32
    %168 = vector.broadcast %cst_50 : f32 to vector<8x128xf32>
    %169 = arith.addf %168, %167 : vector<8x128xf32>
    %170 = arith.divf %168, %169 : vector<8x128xf32>
    %171 = arith.mulf %162, %139 : vector<8x128xf32>
    %172 = arith.mulf %156, %164 : vector<8x128xf32>
    %173 = arith.addf %171, %172 : vector<8x128xf32>
    %174 = math.tanh %173 : vector<8x128xf32>
    %175 = arith.mulf %170, %174 : vector<8x128xf32>
    %176 = arith.index_cast %145 : i32 to index
    %c0_51 = arith.constant 0 : index
    %177 = vector.load %arg9[%176, %c0_51] : memref<64x128xf32, #tpu.memory_space<vmem>>, vector<8x128xf32>
    tpu.vector_store %arg9[%176, %c0_51], %175 {strides = array<i32>} : memref<64x128xf32, #tpu.memory_space<vmem>>, vector<8x128xf32>,
    %c5_i32 = arith.constant 5 : i32
    %c8_i32_52 = arith.constant 8 : i32
    %178 = arith.muli %c5_i32, %c8_i32_52 : i32
    %179 = tpu.assume_multiple %178, 8 : i32
    %180 = arith.index_cast %179 : i32 to index
    %c0_53 = arith.constant 0 : index
    %181 = vector.load %arg8[%180, %c0_53] : memref<64x512xf32, #tpu.memory_space<vmem>>, vector<8x512xf32>
    %c0_54 = arith.constant 0 : index
    %c0_55 = arith.constant 0 : index
    %182 = vector.load %arg3[%c0_54, %c0_55] : memref<128x512xf32, #tpu.memory_space<vmem>>, vector<128x512xf32>
    %cst_56 = arith.constant dense<0.000000e+00> : vector<8x512xf32>
    %183 = tpu.matmul %175, %182, %cst_56 {dimension_numbers = #tpu.dot_dimension_numbers<[1], [0], [0], [1], [0, 0, 1, 1], [], []>} : vector<8x128xf32>, vector<128x512xf32>, vector<8x512xf32> -> vector<8x512xf32>
    %184 = arith.addf %181, %183 : vector<8x512xf32>
    %185 = vector.extract_strided_slice %184 {offsets = [0, 0], sizes = [8, 128], strides = [1, 1]} : vector<8x512xf32> to vector<8x128xf32>
    %186 = arith.negf %185 : vector<8x128xf32>
    %187 = math.exp %186 : vector<8x128xf32>
    %cst_57 = arith.constant 1.000000e+00 : f32
    %188 = vector.broadcast %cst_57 : f32 to vector<8x128xf32>
    %189 = arith.addf %188, %187 : vector<8x128xf32>
    %190 = arith.divf %188, %189 : vector<8x128xf32>
    %191 = vector.extract_strided_slice %184 {offsets = [0, 128], sizes = [8, 128], strides = [1, 1]} : vector<8x512xf32> to vector<8x128xf32>
    %192 = arith.negf %191 : vector<8x128xf32>
    %193 = math.exp %192 : vector<8x128xf32>
    %cst_58 = arith.constant 1.000000e+00 : f32
    %194 = vector.broadcast %cst_58 : f32 to vector<8x128xf32>
    %195 = arith.addf %194, %193 : vector<8x128xf32>
    %196 = arith.divf %194, %195 : vector<8x128xf32>
    %197 = vector.extract_strided_slice %184 {offsets = [0, 256], sizes = [8, 128], strides = [1, 1]} : vector<8x512xf32> to vector<8x128xf32>
    %198 = math.tanh %197 : vector<8x128xf32>
    %199 = vector.extract_strided_slice %184 {offsets = [0, 384], sizes = [8, 128], strides = [1, 1]} : vector<8x512xf32> to vector<8x128xf32>
    %200 = arith.negf %199 : vector<8x128xf32>
    %201 = math.exp %200 : vector<8x128xf32>
    %cst_59 = arith.constant 1.000000e+00 : f32
    %202 = vector.broadcast %cst_59 : f32 to vector<8x128xf32>
    %203 = arith.addf %202, %201 : vector<8x128xf32>
    %204 = arith.divf %202, %203 : vector<8x128xf32>
    %205 = arith.mulf %196, %173 : vector<8x128xf32>
    %206 = arith.mulf %190, %198 : vector<8x128xf32>
    %207 = arith.addf %205, %206 : vector<8x128xf32>
    %208 = math.tanh %207 : vector<8x128xf32>
    %209 = arith.mulf %204, %208 : vector<8x128xf32>
    %210 = arith.index_cast %179 : i32 to index
    %c0_60 = arith.constant 0 : index
    %211 = vector.load %arg9[%210, %c0_60] : memref<64x128xf32, #tpu.memory_space<vmem>>, vector<8x128xf32>
    tpu.vector_store %arg9[%210, %c0_60], %209 {strides = array<i32>} : memref<64x128xf32, #tpu.memory_space<vmem>>, vector<8x128xf32>,
    %c6_i32 = arith.constant 6 : i32
    %c8_i32_61 = arith.constant 8 : i32
    %212 = arith.muli %c6_i32, %c8_i32_61 : i32
    %213 = tpu.assume_multiple %212, 8 : i32
    %214 = arith.index_cast %213 : i32 to index
    %c0_62 = arith.constant 0 : index
    %215 = vector.load %arg8[%214, %c0_62] : memref<64x512xf32, #tpu.memory_space<vmem>>, vector<8x512xf32>
    %c0_63 = arith.constant 0 : index
    %c0_64 = arith.constant 0 : index
    %216 = vector.load %arg3[%c0_63, %c0_64] : memref<128x512xf32, #tpu.memory_space<vmem>>, vector<128x512xf32>
    %cst_65 = arith.constant dense<0.000000e+00> : vector<8x512xf32>
    %217 = tpu.matmul %209, %216, %cst_65 {dimension_numbers = #tpu.dot_dimension_numbers<[1], [0], [0], [1], [0, 0, 1, 1], [], []>} : vector<8x128xf32>, vector<128x512xf32>, vector<8x512xf32> -> vector<8x512xf32>
    %218 = arith.addf %215, %217 : vector<8x512xf32>
    %219 = vector.extract_strided_slice %218 {offsets = [0, 0], sizes = [8, 128], strides = [1, 1]} : vector<8x512xf32> to vector<8x128xf32>
    %220 = arith.negf %219 : vector<8x128xf32>
    %221 = math.exp %220 : vector<8x128xf32>
    %cst_66 = arith.constant 1.000000e+00 : f32
    %222 = vector.broadcast %cst_66 : f32 to vector<8x128xf32>
    %223 = arith.addf %222, %221 : vector<8x128xf32>
    %224 = arith.divf %222, %223 : vector<8x128xf32>
    %225 = vector.extract_strided_slice %218 {offsets = [0, 128], sizes = [8, 128], strides = [1, 1]} : vector<8x512xf32> to vector<8x128xf32>
    %226 = arith.negf %225 : vector<8x128xf32>
    %227 = math.exp %226 : vector<8x128xf32>
    %cst_67 = arith.constant 1.000000e+00 : f32
    %228 = vector.broadcast %cst_67 : f32 to vector<8x128xf32>
    %229 = arith.addf %228, %227 : vector<8x128xf32>
    %230 = arith.divf %228, %229 : vector<8x128xf32>
    %231 = vector.extract_strided_slice %218 {offsets = [0, 256], sizes = [8, 128], strides = [1, 1]} : vector<8x512xf32> to vector<8x128xf32>
    %232 = math.tanh %231 : vector<8x128xf32>
    %233 = vector.extract_strided_slice %218 {offsets = [0, 384], sizes = [8, 128], strides = [1, 1]} : vector<8x512xf32> to vector<8x128xf32>
    %234 = arith.negf %233 : vector<8x128xf32>
    %235 = math.exp %234 : vector<8x128xf32>
    %cst_68 = arith.constant 1.000000e+00 : f32
    %236 = vector.broadcast %cst_68 : f32 to vector<8x128xf32>
    %237 = arith.addf %236, %235 : vector<8x128xf32>
    %238 = arith.divf %236, %237 : vector<8x128xf32>
    %239 = arith.mulf %230, %207 : vector<8x128xf32>
    %240 = arith.mulf %224, %232 : vector<8x128xf32>
    %241 = arith.addf %239, %240 : vector<8x128xf32>
    %242 = math.tanh %241 : vector<8x128xf32>
    %243 = arith.mulf %238, %242 : vector<8x128xf32>
    %244 = arith.index_cast %213 : i32 to index
    %c0_69 = arith.constant 0 : index
    %245 = vector.load %arg9[%244, %c0_69] : memref<64x128xf32, #tpu.memory_space<vmem>>, vector<8x128xf32>
    tpu.vector_store %arg9[%244, %c0_69], %243 {strides = array<i32>} : memref<64x128xf32, #tpu.memory_space<vmem>>, vector<8x128xf32>,
    %c7_i32 = arith.constant 7 : i32
    %c8_i32_70 = arith.constant 8 : i32
    %246 = arith.muli %c7_i32, %c8_i32_70 : i32
    %247 = tpu.assume_multiple %246, 8 : i32
    %248 = arith.index_cast %247 : i32 to index
    %c0_71 = arith.constant 0 : index
    %249 = vector.load %arg8[%248, %c0_71] : memref<64x512xf32, #tpu.memory_space<vmem>>, vector<8x512xf32>
    %c0_72 = arith.constant 0 : index
    %c0_73 = arith.constant 0 : index
    %250 = vector.load %arg3[%c0_72, %c0_73] : memref<128x512xf32, #tpu.memory_space<vmem>>, vector<128x512xf32>
    %cst_74 = arith.constant dense<0.000000e+00> : vector<8x512xf32>
    %251 = tpu.matmul %243, %250, %cst_74 {dimension_numbers = #tpu.dot_dimension_numbers<[1], [0], [0], [1], [0, 0, 1, 1], [], []>} : vector<8x128xf32>, vector<128x512xf32>, vector<8x512xf32> -> vector<8x512xf32>
    %252 = arith.addf %249, %251 : vector<8x512xf32>
    %253 = vector.extract_strided_slice %252 {offsets = [0, 0], sizes = [8, 128], strides = [1, 1]} : vector<8x512xf32> to vector<8x128xf32>
    %254 = arith.negf %253 : vector<8x128xf32>
    %255 = math.exp %254 : vector<8x128xf32>
    %cst_75 = arith.constant 1.000000e+00 : f32
    %256 = vector.broadcast %cst_75 : f32 to vector<8x128xf32>
    %257 = arith.addf %256, %255 : vector<8x128xf32>
    %258 = arith.divf %256, %257 : vector<8x128xf32>
    %259 = vector.extract_strided_slice %252 {offsets = [0, 128], sizes = [8, 128], strides = [1, 1]} : vector<8x512xf32> to vector<8x128xf32>
    %260 = arith.negf %259 : vector<8x128xf32>
    %261 = math.exp %260 : vector<8x128xf32>
    %cst_76 = arith.constant 1.000000e+00 : f32
    %262 = vector.broadcast %cst_76 : f32 to vector<8x128xf32>
    %263 = arith.addf %262, %261 : vector<8x128xf32>
    %264 = arith.divf %262, %263 : vector<8x128xf32>
    %265 = vector.extract_strided_slice %252 {offsets = [0, 256], sizes = [8, 128], strides = [1, 1]} : vector<8x512xf32> to vector<8x128xf32>
    %266 = math.tanh %265 : vector<8x128xf32>
    %267 = vector.extract_strided_slice %252 {offsets = [0, 384], sizes = [8, 128], strides = [1, 1]} : vector<8x512xf32> to vector<8x128xf32>
    %268 = arith.negf %267 : vector<8x128xf32>
    %269 = math.exp %268 : vector<8x128xf32>
    %cst_77 = arith.constant 1.000000e+00 : f32
    %270 = vector.broadcast %cst_77 : f32 to vector<8x128xf32>
    %271 = arith.addf %270, %269 : vector<8x128xf32>
    %272 = arith.divf %270, %271 : vector<8x128xf32>
    %273 = arith.mulf %264, %241 : vector<8x128xf32>
    %274 = arith.mulf %258, %266 : vector<8x128xf32>
    %275 = arith.addf %273, %274 : vector<8x128xf32>
    %276 = math.tanh %275 : vector<8x128xf32>
    %277 = arith.mulf %272, %276 : vector<8x128xf32>
    %278 = arith.index_cast %247 : i32 to index
    %c0_78 = arith.constant 0 : index
    %279 = vector.load %arg9[%278, %c0_78] : memref<64x128xf32, #tpu.memory_space<vmem>>, vector<8x128xf32>
    tpu.vector_store %arg9[%278, %c0_78], %277 {strides = array<i32>} : memref<64x128xf32, #tpu.memory_space<vmem>>, vector<8x128xf32>,
    %c8_i32_79 = arith.constant 8 : i32
    %c0_80 = arith.constant 0 : index
    %c0_81 = arith.constant 0 : index
    %280 = vector.load %arg9[%c0_80, %c0_81] : memref<64x128xf32, #tpu.memory_space<vmem>>, vector<64x128xf32>
    %c0_82 = arith.constant 0 : index
    %c0_83 = arith.constant 0 : index
    %281 = vector.load %arg5[%c0_82, %c0_83] : memref<128x128xf32, #tpu.memory_space<vmem>>, vector<128x128xf32>
    %cst_84 = arith.constant dense<0.000000e+00> : vector<64x128xf32>
    %282 = tpu.matmul %280, %281, %cst_84 {dimension_numbers = #tpu.dot_dimension_numbers<[1], [0], [0], [1], [0, 0, 1, 1], [], []>} : vector<64x128xf32>, vector<128x128xf32>, vector<64x128xf32> -> vector<64x128xf32>
    %c0_85 = arith.constant 0 : index
    %c0_86 = arith.constant 0 : index
    %283 = vector.load %arg6[%c0_85, %c0_86] : memref<1x128xf32, #tpu.memory_space<vmem>>, vector<1x128xf32>
    %284 = vector.broadcast %283 : vector<1x128xf32> to vector<64x128xf32>
    %285 = arith.addf %282, %284 : vector<64x128xf32>
    %c0_87 = arith.constant 0 : index
    %c0_88 = arith.constant 0 : index
    %286 = vector.load %arg7[%c0_87, %c0_88] : memref<64x128xf32, #tpu.memory_space<vmem>>, vector<64x128xf32>
    tpu.vector_store %arg7[%c0_87, %c0_88], %285 {strides = array<i32>} : memref<64x128xf32, #tpu.memory_space<vmem>>, vector<64x128xf32>,
    return
  }
  func.func @transform_0(%arg0: i32) -> (i32, i32) {
    %c0_i32 = arith.constant 0 : i32
    %c0_i32_0 = arith.constant 0 : i32
    %c0_i32_1 = arith.constant 0 : i32
    return %c0_i32, %c0_i32_0 : i32, i32
  }
  func.func @transform_1(%arg0: i32) -> (i32, i32) {
    %c0_i32 = arith.constant 0 : i32
    %c0_i32_0 = arith.constant 0 : i32
    %c0_i32_1 = arith.constant 0 : i32
    return %c0_i32, %c0_i32_0 : i32, i32
  }
  func.func @transform_2(%arg0: i32) -> (i32, i32) {
    %c0_i32 = arith.constant 0 : i32
    %c0_i32_0 = arith.constant 0 : i32
    %c0_i32_1 = arith.constant 0 : i32
    return %c0_i32, %c0_i32_0 : i32, i32
  }
  func.func @transform_3(%arg0: i32) -> (i32, i32) {
    %c0_i32 = arith.constant 0 : i32
    %c0_i32_0 = arith.constant 0 : i32
    %c0_i32_1 = arith.constant 0 : i32
    return %c0_i32, %c0_i32_0 : i32, i32
  }
  func.func @transform_4(%arg0: i32) -> (i32, i32) {
    %c0_i32 = arith.constant 0 : i32
    %c0_i32_0 = arith.constant 0 : i32
    %c0_i32_1 = arith.constant 0 : i32
    return %c0_i32, %c0_i32_0 : i32, i32
  }
  func.func @transform_5(%arg0: i32) -> (i32, i32) {
    %c0_i32 = arith.constant 0 : i32
    %c0_i32_0 = arith.constant 0 : i32
    %c0_i32_1 = arith.constant 0 : i32
    return %c0_i32, %c0_i32_0 : i32, i32
  }
  func.func @transform_6(%arg0: i32) -> (i32, i32) {
    %c0_i32 = arith.constant 0 : i32
    %c0_i32_0 = arith.constant 0 : i32
    %c0_i32_1 = arith.constant 0 : i32
    return %c0_i32, %c0_i32_0 : i32, i32
  }
}

</mosaic_0001>

<bundles_post_ra>
// kernel: my_lstm_forward.1
= control target key start
LH: loop header
LB: loop body
LE: loop exit
PB: predicated region body
PF: predicated region fallthrough
CT: control target
= control target key end

     0   :  { %v3367_v3 = vmov 0.0   ;;  %s4780_s1 = inlined_call_operand.vmem [shape: f32[128,512], index: 1, kind: input, shape index: {}]   ;;  %s4781_s2 = inlined_call_operand.vmem [shape: f32[128,512], index: 2, kind: input, shape index: {}]   ;;  %s4782_s0 = inlined_call_operand.vmem [shape: f32[64,128], index: 0, kind: input, shape index: {}]   ;;  %s4783_s3 = inlined_call_operand.vmem [shape: f32[1,512], index: 3, kind: input, shape index: {}]   ;;  %s4784_s4 = inlined_call_operand.vmem [shape: f32[128,128], index: 4, kind: input, shape index: {}]   ;;  %s4785_s5 = inlined_call_operand.vmem [shape: f32[1,128], index: 5, kind: input, shape index: {}]   ;;  %s4786_s6 = inlined_call_operand.vmem [shape: f32[64,128], index: 6, kind: output, shape index: {}]  }
   0x1   :  { %v32_v0 = vld [vmem:[%s4780_s1 + $0x8] sm:$0xff]  ;;  %v31_v2 = vld [vmem:[%s4780_s1] sm:$0xff]  ;;  %181 = vmatprep.mubr.f32.mxu1 %v3367_v3  ;;  %510 = vmatprep.mubr.f32.mxu0 %v3367_v3 }
   0x2   :  { %v36_v1 = vld [vmem:[%s4780_s1 + $0x28] sm:$0xff]  ;;  %v35_v5 = vld [vmem:[%s4780_s1 + $0x20] sm:$0xff] }
   0x3   :  { %v2566_v4 = vpack.c.bf16 %v36_v1, %v32_v0  ;;  %v383_v6 = vld [vmem:[%s4781_s2 + $0x8] sm:$0xff]  ;;  %v2568_v8 = vpack.c.bf16 %v35_v5, %v31_v2  ;;  %v382_v10 = vld [vmem:[%s4781_s2] sm:$0xff] }
   0x4   :  { %v387_v7 = vld [vmem:[%s4781_s2 + $0x28] sm:$0xff]  ;;  %v386_v11 = vld [vmem:[%s4781_s2 + $0x20] sm:$0xff] }
   0x5   :  { %v3423_v9 = vpack.c.bf16 %v387_v7, %v383_v6  ;;  %v40_v12 = vld [vmem:[%s4780_s1 + $0x48] sm:$0xff]  ;;  %2567 = vmatprep.subr.bf16.mxu1 %v2566_v4  ;;  %v3434_v13 = vpack.c.bf16 %v386_v11, %v382_v10  ;;  %v39_v15 = vld [vmem:[%s4780_s1 + $0x40] sm:$0xff] }
   0x6   :  { %v44_v14 = vld [vmem:[%s4780_s1 + $0x68] sm:$0xff]  ;;  %v43_v16 = vld [vmem:[%s4780_s1 + $0x60] sm:$0xff]  ;;  %2569 = vmatpush1.bf16.msra.mxu1 %v2568_v8 }
   0x7   :  { %2631 = vmatprep.subr.bf16.mxu0 %v3423_v9  ;;  %v2570_v17 = vpack.c.bf16 %v44_v14, %v40_v12  ;;  %v2572_v18 = vpack.c.bf16 %v43_v16, %v39_v15  ;;  %v391_v19 = vld [vmem:[%s4781_s2 + $0x48] sm:$0xff]  ;;  %v390_v21 = vld [vmem:[%s4781_s2 + $0x40] sm:$0xff] }
   0x8   :  { %v395_v20 = vld [vmem:[%s4781_s2 + $0x68] sm:$0xff]  ;;  %2633 = vmatpush1.bf16.msra.mxu0 %v3434_v13  ;;  %v394_v23 = vld [vmem:[%s4781_s2 + $0x60] sm:$0xff] }
   0x9   :  { %v3456_v22 = vpack.c.bf16 %v395_v20, %v391_v19  ;;  %v48_v24 = vld [vmem:[%s4780_s1 + $0x88] sm:$0xff]  ;;  %2571 = vmatprep.subr.bf16.mxu1 %v2570_v17  ;;  %v3467_v26 = vpack.c.bf16 %v394_v23, %v390_v21  ;;  %v47_v28 = vld [vmem:[%s4780_s1 + $0x80] sm:$0xff] }
   0xa   :  { %v52_v25 = vld [vmem:[%s4780_s1 + $0xa8] sm:$0xff]  ;;  %v51_v29 = vld [vmem:[%s4780_s1 + $0xa0] sm:$0xff]  ;;  %2573 = vmatpush1.bf16.msra.mxu1 %v2572_v18 }
   0xb   :  { %v2574_v27 = vpack.c.bf16 %v52_v25, %v48_v24  ;;  %v399_v30 = vld [vmem:[%s4781_s2 + $0x88] sm:$0xff]  ;;  %2635 = vmatprep.subr.bf16.mxu0 %v3456_v22  ;;  %v398_v32 = vld [vmem:[%s4781_s2 + $0x80] sm:$0xff]  ;;  %v2576_v34 = vpack.c.bf16 %v51_v29, %v47_v28 }
   0xc   :  { %v403_v31 = vld [vmem:[%s4781_s2 + $0xa8] sm:$0xff]  ;;  %v402_v33 = vld [vmem:[%s4781_s2 + $0xa0] sm:$0xff]  ;;  %2637 = vmatpush1.bf16.msra.mxu0 %v3467_v26 }
   0xd   :  { %v3488_v35 = vpack.c.bf16 %v403_v31, %v399_v30  ;;  %v56_v36 = vld [vmem:[%s4780_s1 + $0xc8] sm:$0xff]  ;;  %v55_v38 = vld [vmem:[%s4780_s1 + $0xc0] sm:$0xff]  ;;  %2575 = vmatprep.subr.bf16.mxu1 %v2574_v27  ;;  %v3500_v39 = vpack.c.bf16 %v402_v33, %v398_v32 }
   0xe   :  { %v60_v37 = vld [vmem:[%s4780_s1 + $0xe8] sm:$0xff]  ;;  %v59_v41 = vld [vmem:[%s4780_s1 + $0xe0] sm:$0xff]  ;;  %2577 = vmatpush1.bf16.msra.mxu1 %v2576_v34 }
   0xf   :  { %v2578_v40 = vpack.c.bf16 %v60_v37, %v56_v36  ;;  %v407_v42 = vld [vmem:[%s4781_s2 + $0xc8] sm:$0xff]  ;;  %2639 = vmatprep.subr.bf16.mxu0 %v3488_v35  ;;  %v406_v45 = vld [vmem:[%s4781_s2 + $0xc0] sm:$0xff]  ;;  %v2580_v49 = vpack.c.bf16 %v59_v41, %v55_v38  ;;  %v34_v37 = vld [vmem:[%s4780_s1 + $0x18] sm:$0xff] }
  0x10   :  { %v411_v43 = vld [vmem:[%s4781_s2 + $0xe8] sm:$0xff]  ;;  %v410_v46 = vld [vmem:[%s4781_s2 + $0xe0] sm:$0xff]  ;;  %2641 = vmatpush1.bf16.msra.mxu0 %v3500_v39  ;;  %v38_v38 = vld [vmem:[%s4780_s1 + $0x38] sm:$0xff] }
  0x11   :  { %v3512_v44 = vpack.c.bf16 %v411_v43, %v407_v42  ;;  %v64_v47 = vld [vmem:[%s4780_s1 + $0x108] sm:$0xff]  ;;  %2579 = vmatprep.subr.bf16.mxu1 %v2578_v40  ;;  %v3533_v52 = vpack.c.bf16 %v410_v46, %v406_v45  ;;  %v63_v54 = vld [vmem:[%s4780_s1 + $0x100] sm:$0xff]  ;;  %v2598_v42 = vpack.c.bf16 %v38_v38, %v34_v37  ;;  %v33_v43 = vld [vmem:[%s4780_s1 + $0x10] sm:$0xff] }
  0x12   :  { %v68_v48 = vld [vmem:[%s4780_s1 + $0x128] sm:$0xff]  ;;  %v67_v55 = vld [vmem:[%s4780_s1 + $0x120] sm:$0xff]  ;;  %2581 = vmatpush1.bf16.msra.mxu1 %v2580_v49  ;;  %v37_v45 = vld [vmem:[%s4780_s1 + $0x30] sm:$0xff] }
  0x13   :  { %v415_v50 = vld [vmem:[%s4781_s2 + $0x108] sm:$0xff]  ;;  %v2582_v53 = vpack.c.bf16 %v68_v48, %v64_v47  ;;  %v414_v56 = vld [vmem:[%s4781_s2 + $0x100] sm:$0xff]  ;;  %2643 = vmatprep.subr.bf16.mxu0 %v3512_v44  ;;  %v2584_v63 = vpack.c.bf16 %v67_v55, %v63_v54  ;;  %v42_v46 = vld [vmem:[%s4780_s1 + $0x58] sm:$0xff]  ;;  %v2600_v49 = vpack.c.bf16 %v37_v45, %v33_v43 }
  0x14   :  { %v419_v51 = vld [vmem:[%s4781_s2 + $0x128] sm:$0xff]  ;;  %v418_v58 = vld [vmem:[%s4781_s2 + $0x120] sm:$0xff]  ;;  %2645 = vmatpush1.bf16.msra.mxu0 %v3533_v52  ;;  %v46_v47 = vld [vmem:[%s4780_s1 + $0x78] sm:$0xff] }
  0x15   :  { %v3545_v57 = vpack.c.bf16 %v419_v51, %v415_v50  ;;  %v72_v59 = vld [vmem:[%s4780_s1 + $0x148] sm:$0xff]  ;;  %2583 = vmatprep.subr.bf16.mxu1 %v2582_v53  ;;  %v3563_v0 = vpack.c.bf16 %v418_v58, %v414_v56  ;;  %v71_v2 = vld [vmem:[%s4780_s1 + $0x140] sm:$0xff]  ;;  %v2602_v50 = vpack.c.bf16 %v46_v47, %v42_v46  ;;  %v41_v51 = vld [vmem:[%s4780_s1 + $0x50] sm:$0xff] }
  0x16   :  { %v76_v60 = vld [vmem:[%s4780_s1 + $0x168] sm:$0xff]  ;;  %v75_v4 = vld [vmem:[%s4780_s1 + $0x160] sm:$0xff]  ;;  %2585 = vmatpush1.bf16.msra.mxu1 %v2584_v63  ;;  %v45_v53 = vld [vmem:[%s4780_s1 + $0x70] sm:$0xff] }
  0x17   :  { %v423_v61 = vld [vmem:[%s4781_s2 + $0x148] sm:$0xff]  ;;  %v2586_v1 = vpack.c.bf16 %v76_v60, %v72_v59  ;;  %v422_v5 = vld [vmem:[%s4781_s2 + $0x140] sm:$0xff]  ;;  %2647 = vmatprep.subr.bf16.mxu0 %v3545_v57  ;;  %v2588_v14 = vpack.c.bf16 %v75_v4, %v71_v2  ;;  %v50_v54 = vld [vmem:[%s4780_s1 + $0x98] sm:$0xff]  ;;  %v2604_v58 = vpack.c.bf16 %v45_v53, %v41_v51 }
  0x18   :  { %v427_v62 = vld [vmem:[%s4781_s2 + $0x168] sm:$0xff]  ;;  %v426_v7 = vld [vmem:[%s4781_s2 + $0x160] sm:$0xff]  ;;  %2649 = vmatpush1.bf16.msra.mxu0 %v3563_v0  ;;  %v54_v55 = vld [vmem:[%s4780_s1 + $0xb8] sm:$0xff] }
  0x19   :  { %v3575_v6 = vpack.c.bf16 %v427_v62, %v423_v61  ;;  %v80_v8 = vld [vmem:[%s4780_s1 + $0x188] sm:$0xff]  ;;  %2587 = vmatprep.subr.bf16.mxu1 %v2586_v1  ;;  %v3593_v15 = vpack.c.bf16 %v426_v7, %v422_v5  ;;  %v79_v17 = vld [vmem:[%s4780_s1 + $0x180] sm:$0xff]  ;;  %v2606_v59 = vpack.c.bf16 %v54_v55, %v50_v54  ;;  %v49_v60 = vld [vmem:[%s4780_s1 + $0x90] sm:$0xff] }
  0x1a   :  { %v84_v10 = vld [vmem:[%s4780_s1 + $0x1a8] sm:$0xff]  ;;  %v83_v18 = vld [vmem:[%s4780_s1 + $0x1a0] sm:$0xff]  ;;  %2589 = vmatpush1.bf16.msra.mxu1 %v2588_v14  ;;  %v58_v61 = vld [vmem:[%s4780_s1 + $0xd8] sm:$0xff] }
  0x1b   :  { %v431_v11 = vld [vmem:[%s4781_s2 + $0x188] sm:$0xff]  ;;  %v2590_v16 = vpack.c.bf16 %v84_v10, %v80_v8  ;;  %v430_v19 = vld [vmem:[%s4781_s2 + $0x180] sm:$0xff]  ;;  %2651 = vmatprep.subr.bf16.mxu0 %v3575_v6  ;;  %v2592_v28 = vpack.c.bf16 %v83_v18, %v79_v17  ;;  %v62_v62 = vld [vmem:[%s4780_s1 + $0xf8] sm:$0xff] }
  0x1c   :  { %v435_v12 = vld [vmem:[%s4781_s2 + $0x1a8] sm:$0xff]  ;;  %v434_v21 = vld [vmem:[%s4781_s2 + $0x1a0] sm:$0xff]  ;;  %2653 = vmatpush1.bf16.msra.mxu0 %v3593_v15  ;;  %v3709_v63 = vld [vmem:[%s4782_s0 + $0x10] sm:$0xff]  ;;  %v2610_v2 = vpack.c.bf16 %v62_v62, %v58_v61 }
  0x1d   :  { %v3605_v20 = vpack.c.bf16 %v435_v12, %v431_v11  ;;  %v88_v23 = vld [vmem:[%s4780_s1 + $0x1c8] sm:$0xff]  ;;  %2591 = vmatprep.subr.bf16.mxu1 %v2590_v16  ;;  %v3623_v29 = vpack.c.bf16 %v434_v21, %v430_v19  ;;  %v87_v31 = vld [vmem:[%s4780_s1 + $0x1c0] sm:$0xff]  ;;  %v61_v4 = vld [vmem:[%s4780_s1 + $0xf0] sm:$0xff] }
  0x1e   :  { %v92_v24 = vld [vmem:[%s4780_s1 + $0x1e8] sm:$0xff]  ;;  %v91_v32 = vld [vmem:[%s4780_s1 + $0x1e0] sm:$0xff]  ;;  %2593 = vmatpush1.bf16.msra.mxu1 %v2592_v28  ;;  %v70_v5 = vld [vmem:[%s4780_s1 + $0x138] sm:$0xff] }
  0x1f   :  { %v439_v25 = vld [vmem:[%s4781_s2 + $0x1c8] sm:$0xff]  ;;  %v2594_v30 = vpack.c.bf16 %v92_v24, %v88_v23  ;;  %v438_v33 = vld [vmem:[%s4781_s2 + $0x1c0] sm:$0xff]  ;;  %2655 = vmatprep.subr.bf16.mxu0 %v3605_v20  ;;  %v2596_v40 = vpack.c.bf16 %v91_v32, %v87_v31  ;;  %v3730_v7 = vld [vmem:[%s4782_s0 + $0x18] sm:$0xff] }
  0x20   :  { %v443_v27 = vld [vmem:[%s4781_s2 + $0x1e8] sm:$0xff]  ;;  %v442_v36 = vld [vmem:[%s4781_s2 + $0x1e0] sm:$0xff]  ;;  %2657 = vmatpush1.bf16.msra.mxu0 %v3623_v29  ;;  %v65_v11 = vld [vmem:[%s4780_s1 + $0x110] sm:$0xff] }
  0x21   :  { %v3635_v34 = vpack.c.bf16 %v443_v27, %v439_v25  ;;  %2595 = vmatprep.subr.bf16.mxu1 %v2594_v30  ;;  %v3647_v41 = vpack.c.bf16 %v442_v36, %v438_v33  ;;  %v3665_v48 = vld [vmem:[%s4782_s0] sm:$0xff]  ;;  %v3686_v56 = vld [vmem:[%s4782_s0 + $0x8] sm:$0xff]  ;;  %v78_v12 = vld [vmem:[%s4780_s1 + $0x178] sm:$0xff] }
  0x22   :  { %2597 = vmatpush1.bf16.msra.mxu1 %v2596_v40  ;;  %v3751_v14 = vld [vmem:[%s4782_s0 + $0x20] sm:$0xff]  ;;  %v73_v18 = vld [vmem:[%s4780_s1 + $0x150] sm:$0xff]  ;;  %v86_v19 = vld [vmem:[%s4780_s1 + $0x1b8] sm:$0xff] }
  0x23   :  { %2659 = vmatprep.subr.bf16.mxu0 %v3635_v34  ;;  %2599 = vmatprep.subr.bf16.mxu1 %v2598_v42  ;;  %v3772_v21 = vld [vmem:[%s4782_s0 + $0x28] sm:$0xff]  ;;  %v81_v25 = vld [vmem:[%s4780_s1 + $0x190] sm:$0xff]  ;;  %v94_v27 = vld [vmem:[%s4780_s1 + $0x1f8] sm:$0xff] }
  0x24   :  { %2661 = vmatpush1.bf16.msra.mxu0 %v3647_v41  ;;  %v3793_v28 = vld [vmem:[%s4782_s0 + $0x30] sm:$0xff]  ;;  %v389_v33 = vld [vmem:[%s4781_s2 + $0x38] sm:$0xff] }
  0x25   :  { %2695 = vmatprep.subr.bf16.mxu0 %v3423_v9  ;;  %182 = vmatmul.mubr.f32.vlgmr.msra.gmra.mrb[0].mxu1 %v3665_v48  ;;  %v53_v9 = vld [vmem:[%s4780_s1 + $0xb0] sm:$0xff]  ;;  %v3814_v36 = vld [vmem:[%s4782_s0 + $0x38] sm:$0xff] }
  0x26   :  { %2601 = vmatpush1.bf16.msra.mxu1 %v2600_v49  ;;  %187 = vmatprep.mubr.f32.mxu1 %v3367_v3  ;;  %v2608_v1 = vpack.c.bf16 %v53_v9, %v49_v60  ;;  %v89_v32 = vld [vmem:[%s4780_s1 + $0x1d0] sm:$0xff]  ;;  %v393_v40 = vld [vmem:[%s4781_s2 + $0x58] sm:$0xff] }
  0x27   :  { %511 = vmatmul.mubr.f32.vlgmr.msra.gmra.mrb[0].mxu0 %v3367_v3  ;;  %2603 = vmatprep.subr.bf16.mxu1 %v2602_v50  ;;  %v397_v42 = vld [vmem:[%s4781_s2 + $0x78] sm:$0xff]  ;;  %v392_v46 = vld [vmem:[%s4781_s2 + $0x50] sm:$0xff] }
  0x28   :  { %2697 = vmatpush1.bf16.msra.mxu0 %v3434_v13  ;;  %752 = vmatprep.mubr.f32.mxu0 %v3367_v3  ;;  %v57_v13 = vld [vmem:[%s4780_s1 + $0xd0] sm:$0xff]  ;;  %v3837_v45 = vpack.c.bf16 %v397_v42, %v393_v40  ;;  %v405_v47 = vld [vmem:[%s4781_s2 + $0xb8] sm:$0xff] }
  0x29   :  { %188 = vmatmul.mubr.f32.gmra.mrb[2].mxu1 %v3686_v56  ;;  %2699 = vmatprep.subr.bf16.mxu0 %v3456_v22  ;;  %v66_v22 = vld [vmem:[%s4780_s1 + $0x118] sm:$0xff]  ;;  %v2612_v8 = vpack.c.bf16 %v61_v4, %v57_v13  ;;  %v400_v51 = vld [vmem:[%s4781_s2 + $0x90] sm:$0xff] }
  0x2a   :  { %2605 = vmatpush1.bf16.msra.mxu1 %v2604_v58  ;;  %193 = vmatprep.mubr.f32.mxu1 %v3367_v3  ;;  %v2614_v10 = vpack.c.bf16 %v70_v5, %v66_v22  ;;  %v413_v53 = vld [vmem:[%s4781_s2 + $0xf8] sm:$0xff]  ;;  %v408_v58 = vld [vmem:[%s4781_s2 + $0xd0] sm:$0xff] }
  0x2b   :  { %2607 = vmatprep.subr.bf16.mxu1 %v2606_v59  ;;  %v412_v59 = vld [vmem:[%s4781_s2 + $0xf0] sm:$0xff]  ;;  %v421_v60 = vld [vmem:[%s4781_s2 + $0x138] sm:$0xff] }
  0x2c   :  { %2701 = vmatpush1.bf16.msra.mxu0 %v3467_v26  ;;  %v69_v26 = vld [vmem:[%s4780_s1 + $0x130] sm:$0xff]  ;;  %v3895_v9 = vpack.c.bf16 %v412_v59, %v408_v58 }
  0x2d   :  { %194 = vmatmul.mubr.f32.gmra.mrb[4].mxu1 %v3709_v63  ;;  %2703 = vmatprep.subr.bf16.mxu0 %v3488_v35  ;;  %v74_v35 = vld [vmem:[%s4780_s1 + $0x158] sm:$0xff]  ;;  %v2616_v16 = vpack.c.bf16 %v69_v26, %v65_v11  ;;  %v416_v62 = vld [vmem:[%s4781_s2 + $0x110] sm:$0xff] }
  0x2e   :  { %2609 = vmatpush1.bf16.msra.mxu1 %v2608_v1  ;;  %199 = vmatprep.mubr.f32.mxu1 %v3367_v3  ;;  %v2618_v17 = vpack.c.bf16 %v78_v12, %v74_v35  ;;  %v420_v1 = vld [vmem:[%s4781_s2 + $0x130] sm:$0xff]  ;;  %v441_v12 = vld [vmem:[%s4781_s2 + $0x1d8] sm:$0xff] }
  0x2f   :  { %2611 = vmatprep.subr.bf16.mxu1 %v2610_v2  ;;  %v429_v2 = vld [vmem:[%s4781_s2 + $0x178] sm:$0xff]  ;;  %v3915_v13 = vpack.c.bf16 %v420_v1, %v416_v62  ;;  %v424_v22 = vld [vmem:[%s4781_s2 + $0x150] sm:$0xff] }
  0x30   :  { %2705 = vmatpush1.bf16.msra.mxu0 %v3500_v39  ;;  %v77_v39 = vld [vmem:[%s4780_s1 + $0x170] sm:$0xff] }
  0x31   :  { %200 = vmatmul.mubr.f32.gmra.mrb[6].mxu1 %v3730_v7  ;;  %2707 = vmatprep.subr.bf16.mxu0 %v3512_v44  ;;  %v82_v44 = vld [vmem:[%s4780_s1 + $0x198] sm:$0xff]  ;;  %v2620_v23 = vpack.c.bf16 %v77_v39, %v73_v18  ;;  %v428_v5 = vld [vmem:[%s4781_s2 + $0x170] sm:$0xff] }
  0x32   :  { %2613 = vmatpush1.bf16.msra.mxu1 %v2612_v8  ;;  %205 = vmatprep.mubr.f32.mxu1 %v3367_v3  ;;  %v2622_v24 = vpack.c.bf16 %v86_v19, %v82_v44  ;;  %v437_v8 = vld [vmem:[%s4781_s2 + $0x1b8] sm:$0xff]  ;;  %v432_v26 = vld [vmem:[%s4781_s2 + $0x190] sm:$0xff]  ;;  %v97_v19 = vlaneseq }
  0x33   :  { %2615 = vmatprep.subr.bf16.mxu1 %v2614_v10  ;;  %v3935_v10 = vpack.c.bf16 %v428_v5, %v424_v22  ;;  %v436_v35 = vld [vmem:[%s4781_s2 + $0x1b0] sm:$0xff] }
  0x34   :  { %2709 = vmatpush1.bf16.msra.mxu0 %v3533_v52  ;;  %v85_v52 = vld [vmem:[%s4780_s1 + $0x1b0] sm:$0xff] }
  0x35   :  { %206 = vmatmul.mubr.f32.gmra.mrb[8].mxu1 %v3751_v14  ;;  %2711 = vmatprep.subr.bf16.mxu0 %v3545_v57  ;;  %v90_v57 = vld [vmem:[%s4780_s1 + $0x1d8] sm:$0xff]  ;;  %v2624_v30 = vpack.c.bf16 %v85_v52, %v81_v25  ;;  %v440_v18 = vld [vmem:[%s4781_s2 + $0x1d0] sm:$0xff] }
  0x36   :  { %2617 = vmatpush1.bf16.msra.mxu1 %v2616_v16  ;;  %211 = vmatprep.mubr.f32.mxu1 %v3367_v3  ;;  %v2626_v31 = vpack.c.bf16 %v94_v27, %v90_v57  ;;  %v3955_v16 = vpack.c.bf16 %v436_v35, %v432_v26  ;;  %v444_v39 = vld [vmem:[%s4781_s2 + $0x1f0] sm:$0xff] }
  0x37   :  { %2619 = vmatprep.subr.bf16.mxu1 %v2618_v17  ;;  %v3969_v44 = vpack.c.bf16 %v444_v39, %v440_v18 }
  0x38   :  { %2713 = vmatpush1.bf16.msra.mxu0 %v3563_v0  ;;  %v93_v0 = vld [vmem:[%s4780_s1 + $0x1f0] sm:$0xff] }
  0x39   :  { %212 = vmatmul.mubr.f32.gmra.mrb[10].mxu1 %v3772_v21  ;;  %2715 = vmatprep.subr.bf16.mxu0 %v3575_v6  ;;  %v385_v6 = vld [vmem:[%s4781_s2 + $0x18] sm:$0xff]  ;;  %v2628_v37 = vpack.c.bf16 %v93_v0, %v89_v32 }
  0x3a   :  { %2621 = vmatpush1.bf16.msra.mxu1 %v2620_v23  ;;  %217 = vmatprep.mubr.f32.mxu1 %v3367_v3  ;;  %v3816_v38 = vpack.c.bf16 %v389_v33, %v385_v6 }
  0x3b   :  { %2623 = vmatprep.subr.bf16.mxu1 %v2622_v24  ;;  %v95_v24 = vld [vmem:[%s4783_s3] sm:$0xf] }
  0x3c   :  { %2717 = vmatpush1.bf16.msra.mxu0 %v3593_v15  ;;  %v384_v15 = vld [vmem:[%s4781_s2 + $0x10] sm:$0xff] }
  0x3d   :  { %218 = vmatmul.mubr.f32.gmra.mrb[12].mxu1 %v3793_v28  ;;  %2719 = vmatprep.subr.bf16.mxu0 %v3605_v20  ;;  %v388_v20 = vld [vmem:[%s4781_s2 + $0x30] sm:$0xff] }
  0x3e   :  { %2625 = vmatpush1.bf16.msra.mxu1 %v2624_v30  ;;  %223 = vmatprep.mubr.f32.mxu1 %v3367_v3  ;;  %v3834_v43 = vpack.c.bf16 %v388_v20, %v384_v15 }
  0x3f   :  { %2627 = vmatprep.subr.bf16.mxu1 %v2626_v31 }
  0x40   :  { %2721 = vmatpush1.bf16.msra.mxu0 %v3623_v29  ;;  %v396_v29 = vld [vmem:[%s4781_s2 + $0x70] sm:$0xff] }
  0x41   :  { %224 = vmatmul.mubr.f32.gmra.mrb[14].mxu1 %v3814_v36  ;;  %2723 = vmatprep.subr.bf16.mxu0 %v3635_v34  ;;  %v401_v34 = vld [vmem:[%s4781_s2 + $0x98] sm:$0xff]  ;;  %v3855_v49 = vpack.c.bf16 %v396_v29, %v392_v46 }
  0x42   :  { %2629 = vmatpush1.bf16.msra.mxu1 %v2628_v37  ;;  %294 = vmatprep.mubr.f32.mxu1 %v3367_v3  ;;  %v3858_v50 = vpack.c.bf16 %v405_v47, %v401_v34 }
  0x43   :  { %2663 = vmatprep.subr.bf16.mxu1 %v3816_v38 }
  0x44   :  { %2725 = vmatpush1.bf16.msra.mxu0 %v3647_v41  ;;  %v404_v41 = vld [vmem:[%s4781_s2 + $0xb0] sm:$0xff] }
  0x45   :  { %295 = vmatmul.mubr.f32.vlgmr.msra.gmra.mrb[16].mxu1 %v3665_v48  ;;  %v409_v48 = vld [vmem:[%s4781_s2 + $0xd8] sm:$0xff]  ;;  %v3875_v54 = vpack.c.bf16 %v404_v41, %v400_v51 }
  0x46   :  { %2665 = vmatpush1.bf16.msra.mxu1 %v3834_v43  ;;  %300 = vmatprep.mubr.f32.mxu1 %v3367_v3  ;;  %v3878_v55 = vpack.c.bf16 %v413_v53, %v409_v48 }
  0x47   :  { %2667 = vmatprep.subr.bf16.mxu1 %v3837_v45 }
  0x49   :  { %301 = vmatmul.mubr.f32.gmra.mrb[18].mxu1 %v3686_v56  ;;  %v417_v56 = vld [vmem:[%s4781_s2 + $0x118] sm:$0xff] }
  0x4a   :  { %2669 = vmatpush1.bf16.msra.mxu1 %v3855_v49  ;;  %306 = vmatprep.mubr.f32.mxu1 %v3367_v3  ;;  %v3898_v61 = vpack.c.bf16 %v421_v60, %v417_v56 }
  0x4b   :  { %2671 = vmatprep.subr.bf16.mxu1 %v3858_v50 }
  0x4d   :  { %307 = vmatmul.mubr.f32.gmra.mrb[20].mxu1 %v3709_v63  ;;  %v425_v63 = vld [vmem:[%s4781_s2 + $0x158] sm:$0xff] }
  0x4e   :  { %2673 = vmatpush1.bf16.msra.mxu1 %v3875_v54  ;;  %312 = vmatprep.mubr.f32.mxu1 %v3367_v3  ;;  %v3918_v4 = vpack.c.bf16 %v429_v2, %v425_v63 }
  0x4f   :  { %2675 = vmatprep.subr.bf16.mxu1 %v3878_v55 }
  0x51   :  { %313 = vmatmul.mubr.f32.gmra.mrb[22].mxu1 %v3730_v7  ;;  %v433_v7 = vld [vmem:[%s4781_s2 + $0x198] sm:$0xff] }
  0x52   :  { %2677 = vmatpush1.bf16.msra.mxu1 %v3895_v9  ;;  %318 = vmatprep.mubr.f32.mxu1 %v3367_v3  ;;  %v3938_v11 = vpack.c.bf16 %v437_v8, %v433_v7 }
  0x53   :  { %2679 = vmatprep.subr.bf16.mxu1 %v3898_v61 }
  0x55   :  { %319 = vmatmul.mubr.f32.gmra.mrb[24].mxu1 %v3751_v14  ;;  %v445_v14 = vld [vmem:[%s4781_s2 + $0x1f8] sm:$0xff] }
  0x56   :  { %2681 = vmatpush1.bf16.msra.mxu1 %v3915_v13  ;;  %324 = vmatprep.mubr.f32.mxu1 %v3367_v3  ;;  %v3958_v17 = vpack.c.bf16 %v445_v14, %v441_v12 }
  0x57   :  { %2683 = vmatprep.subr.bf16.mxu1 %v3918_v4 }
  0x59   :  { %325 = vmatmul.mubr.f32.gmra.mrb[26].mxu1 %v3772_v21  ;;  %v98_v21 = vshrl.u32 %v97_v19, 7 }
  0x5a   :  { %2685 = vmatpush1.bf16.msra.mxu1 %v3935_v10  ;;  %330 = vmatprep.mubr.f32.mxu1 %v3367_v3 }
  0x5b   :  { %2687 = vmatprep.subr.bf16.mxu1 %v3938_v11  ;;  %v99_v23 = vsub.s32 0, %v98_v21  ;;  %v103_v25 = vsub.s32 1, %v98_v21  ;;  %v107_v18 = vsub.s32 2, %v98_v21  ;;  %v111_v19 = vsub.s32 3, %v98_v21 }
  0x5d   :  { %331 = vmatmul.mubr.f32.gmra.mrb[28].mxu1 %v3793_v28  ;;  %v100_v52 = vrot.slane %v95_v24, %v99_v23  ;;  %v104_v57 = vrot.slane %v95_v24, %v103_v25 }
  0x5e   :  { %2689 = vmatpush1.bf16.msra.mxu1 %v3955_v16  ;;  %336 = vmatprep.mubr.f32.mxu1 %v3367_v3 }
  0x5f   :  { %2691 = vmatprep.subr.bf16.mxu1 %v3958_v17 }
  0x61   :  { %337 = vmatmul.mubr.f32.gmra.mrb[30].mxu1 %v3814_v36 }
  0x62   :  { %2693 = vmatpush1.bf16.msra.mxu1 %v3969_v44  ;;  %581 = vmatprep.mubr.f32.mxu1 %v3367_v3 }
  0x63   :  { %2727 = vmatprep.subr.bf16.mxu1 %v3816_v38 }
  0x65   :  { %582 = vmatmul.mubr.f32.vlgmr.msra.gmra.mrb[16].mxu1 %v3367_v3 }
  0x66   :  { %2729 = vmatpush1.bf16.msra.mxu1 %v3834_v43  ;;  %823 = vmatprep.mubr.f32.mxu1 %v3367_v3 }
  0x67   :  { %2731 = vmatprep.subr.bf16.mxu1 %v3837_v45 }
  0x6a   :  { %2733 = vmatpush1.bf16.msra.mxu1 %v3855_v49 }
  0x6b   :  { %2735 = vmatprep.subr.bf16.mxu1 %v3858_v50 }
  0x6e   :  { %2737 = vmatpush1.bf16.msra.mxu1 %v3875_v54 }
  0x6f   :  { %2739 = vmatprep.subr.bf16.mxu1 %v3878_v55 }
  0x72   :  { %2741 = vmatpush1.bf16.msra.mxu1 %v3895_v9 }
  0x73   :  { %2743 = vmatprep.subr.bf16.mxu1 %v3898_v61 }
  0x76   :  { %2745 = vmatpush1.bf16.msra.mxu1 %v3915_v13 }
  0x77   :  { %2747 = vmatprep.subr.bf16.mxu1 %v3918_v4 }
  0x7a   :  { %2749 = vmatpush1.bf16.msra.mxu1 %v3935_v10 }
  0x7b   :  { %2751 = vmatprep.subr.bf16.mxu1 %v3938_v11 }
  0x7e   :  { %2753 = vmatpush1.bf16.msra.mxu1 %v3955_v16 }
  0x7f   :  { %2755 = vmatprep.subr.bf16.mxu1 %v3958_v17 }
  0x82   :  { %2757 = vmatpush1.bf16.msra.mxu1 %v3969_v44 }
  0x83   :  { %2791 = vmatprep.subr.bf16.mxu1 %v3816_v38 }
  0xf8   :  { %v183_v27 = vpop.f32.mrb[0].mxu1 }
  0xf9   :  { %v184_v28 = vadd.f32 %v183_v27, %v100_v52  ;;  %v185_v30 = vpop.f32.mrb[1].mxu1  ;;  %v4025_v27 = vrot.slane %v95_v24, %v107_v18 }
  0xfa   :  { %v512_v31 = vpop.f32.mrb[0].mxu0  ;;  %v186_v32 = vadd.f32 %v185_v30, %v104_v57  ;;  %v4027_v30 = vrot.slane %v95_v24, %v111_v19  ;;  %v888_v19 = vld [vmem:[%s4781_s2 + $0xa8] sm:$0xff] }
  0xfb   :  { %v514_v0 = vpop.f32.mrb[1].mxu0  ;;  %v588_v6 = vadd.f32 %v512_v31, %v184_v28 }
  0xfc   :  { %v589_v33 = vadd.f32 %v514_v0, %v186_v32  ;;  %v189_v36 = vpop.f32.mrb[2].mxu1 }
  0xfd   :  { %v3997_v37 = vadd.f32 %v189_v36, %v100_v52  ;;  %v191_v15 = vpop.f32.mrb[3].mxu1  ;;  %v2473_v14 = vmul.f32 -1.442695, %v588_v6 }
  0xfe   :  { %v3999_v20 = vadd.f32 %v191_v15, %v104_v57  ;;  %v2474_v12 = vmul.f32 -1.442695, %v589_v33 }
 0x100   :  { %v195_v40 = vpop.f32.mrb[4].mxu1  ;;  %3239 = vpow2.f32 %v2474_v12  ;;  %v875_v12 = vld [vmem:[%s4781_s2 + $0x40] sm:$0xff] }
 0x101   :  { %v4001_v42 = vadd.f32 %v195_v40, %v100_v52  ;;  %v197_v46 = vpop.f32.mrb[5].mxu1  ;;  %3241 = vpow2.f32 %v2473_v14  ;;  %v879_v14 = vld [vmem:[%s4781_s2 + $0x60] sm:$0xff] }
 0x102   :  { %v4003_v29 = vadd.f32 %v197_v46, %v104_v57  ;;  %v4088_v18 = vpack.c.bf16 %v879_v14, %v875_v12 }
 0x104   :  { %v201_v34 = vpop.f32.mrb[6].mxu1 }
 0x105   :  { %v4005_v47 = vadd.f32 %v201_v34, %v100_v52  ;;  %v203_v51 = vpop.f32.mrb[7].mxu1 }
 0x106   :  { %v4007_v41 = vadd.f32 %v203_v51, %v104_v57 }
 0x108   :  { %v207_v48 = vpop.f32.mrb[8].mxu1 }
 0x109   :  { %v4009_v53 = vadd.f32 %v207_v48, %v100_v52  ;;  %v209_v58 = vpop.f32.mrb[9].mxu1 }
 0x10a   :  { %v4011_v59 = vadd.f32 %v209_v58, %v104_v57  ;;  %v3240_v39 = vpop.eup %3239  ;;  %v868_v58 = vld [vmem:[%s4781_s2 + $0x8] sm:$0xff] }
 0x10b   :  { %v3242_v23 = vpop.eup %3241  ;;  %v601_v25 = vadd.f32 1.0, %v3240_v39  ;;  %v884_v39 = vld [vmem:[%s4781_s2 + $0x88] sm:$0xff] }
 0x10c   :  { %v213_v56 = vpop.f32.mrb[10].mxu1  ;;  %v595_v28 = vadd.f32 1.0, %v3242_v23  ;;  %v4098_v23 = vpack.c.bf16 %v888_v19, %v884_v39  ;;  %v915_v39 = vld [vmem:[%s4781_s2 + $0x180] sm:$0xff] }
 0x10d   :  { %v4013_v60 = vadd.f32 %v213_v56, %v100_v52  ;;  %v215_v62 = vpop.f32.mrb[11].mxu1  ;;  %3243 = vrcp.f32 %v601_v25  ;;  %v872_v56 = vld [vmem:[%s4781_s2 + $0x28] sm:$0xff]  ;;  %v883_v25 = vld [vmem:[%s4781_s2 + $0x80] sm:$0xff] }
 0x10e   :  { %v4015_v1 = vadd.f32 %v215_v62, %v104_v57  ;;  %3245 = vrcp.f32 %v595_v28  ;;  %v4062_v62 = vpack.c.bf16 %v872_v56, %v868_v58  ;;  %v887_v28 = vld [vmem:[%s4781_s2 + $0xa0] sm:$0xff]  ;;  %v912_v58 = vld [vmem:[%s4781_s2 + $0x168] sm:$0xff] }
 0x10f   :  { %v907_v56 = vld [vmem:[%s4781_s2 + $0x140] sm:$0xff] }
 0x110   :  { %v219_v63 = vpop.f32.mrb[12].mxu1  ;;  %2759 = vmatprep.subr.bf16.mxu0 %v4062_v62  ;;  %v919_v19 = vld [vmem:[%s4781_s2 + $0x1a0] sm:$0xff] }
 0x111   :  { %v4017_v2 = vadd.f32 %v219_v63, %v100_v52  ;;  %v221_v22 = vpop.f32.mrb[13].mxu1  ;;  %v867_v63 = vld [vmem:[%s4781_s2] sm:$0xff] }
 0x112   :  { %v4019_v5 = vadd.f32 %v221_v22, %v104_v57 }
 0x114   :  { %v225_v7 = vpop.f32.mrb[14].mxu1 }
 0x115   :  { %v4021_v8 = vadd.f32 %v225_v7, %v100_v52  ;;  %v227_v26 = vpop.f32.mrb[15].mxu1  ;;  %v880_v7 = vld [vmem:[%s4781_s2 + $0x68] sm:$0xff] }
 0x116   :  { %v4023_v35 = vadd.f32 %v227_v26, %v104_v57 }
 0x117   :  { %v3244_v6 = vpop.eup %3243 }
 0x118   :  { %v3246_v21 = vpop.eup %3245  ;;  %v611_v36 = vmul.f32 0.0, %v3244_v6  ;;  %v895_v6 = vld [vmem:[%s4781_s2 + $0xe0] sm:$0xff] }
 0x138   :  { %v583_v31 = vpop.f32.mrb[16].mxu1 }
 0x139   :  { %v3206_v52 = vadd.f32 %v583_v31, %v4025_v27  ;;  %v585_v57 = vpop.f32.mrb[17].mxu1  ;;  %v4106_v31 = vpack.c.bf16 %v887_v28, %v883_v25  ;;  %v924_v25 = vld [vmem:[%s4781_s2 + $0x1c8] sm:$0xff] }
 0x13a   :  { %v3207_v32 = vadd.f32 %v585_v57, %v4027_v30  ;;  %v896_v57 = vld [vmem:[%s4781_s2 + $0xe8] sm:$0xff] }
 0x13b   :  { %3247 = vtanh.f32 %v3206_v52  ;;  %v892_v52 = vld [vmem:[%s4781_s2 + $0xc8] sm:$0xff] }
 0x13c   :  { %v2475_v0 = vmul.f32 -1.442695, %v3207_v32  ;;  %v4116_v32 = vpack.c.bf16 %v896_v57, %v892_v52  ;;  %v928_v28 = vld [vmem:[%s4781_s2 + $0x1e8] sm:$0xff]  ;;  %v4184_v52 = vpack.c.bf16 %v919_v19, %v915_v39 }
 0x13d   :  { %v4187_v57 = vpack.c.bf16 %v928_v28, %v924_v25 }
 0x13e   :  { %3249 = vpow2.f32 %v2475_v0  ;;  %v891_v0 = vld [vmem:[%s4781_s2 + $0xc0] sm:$0xff] }
 0x145   :  { %v3248_v33 = vpop.eup %3247 }
 0x146   :  { %v612_v15 = vmul.f32 %v3248_v33, %v3246_v21  ;;  %v4124_v21 = vpack.c.bf16 %v895_v6, %v891_v0  ;;  %v900_v33 = vld [vmem:[%s4781_s2 + $0x108] sm:$0xff]  ;;  %v923_v0 = vld [vmem:[%s4781_s2 + $0x1c0] sm:$0xff] }
 0x147   :  { %v927_v6 = vld [vmem:[%s4781_s2 + $0x1e0] sm:$0xff] }
 0x148   :  { %v3250_v40 = vpop.eup %3249  ;;  %v4031_v46 = vadd.f32 %v612_v15, %v611_v36  ;;  %v904_v36 = vld [vmem:[%s4781_s2 + $0x128] sm:$0xff] }
 0x149   :  { %v608_v24 = vadd.f32 1.0, %v3250_v40  ;;  %v4134_v15 = vpack.c.bf16 %v904_v36, %v900_v33  ;;  %v899_v40 = vld [vmem:[%s4781_s2 + $0x100] sm:$0xff]  ;;  %v4196_v33 = vpack.c.bf16 %v927_v6, %v923_v0 }
 0x14a   :  { %3251 = vtanh.f32 %v4031_v46 }
 0x14b   :  { %3253 = vrcp.f32 %v608_v24  ;;  %v903_v24 = vld [vmem:[%s4781_s2 + $0x120] sm:$0xff] }
 0x154   :  { %v3252_v34 = vpop.eup %3251 }
 0x155   :  { %v3254_v51 = vpop.eup %3253 }
 0x156   :  { %v4034_v48 = vmul.f32 %v3254_v51, %v3252_v34  ;;  %v4142_v34 = vpack.c.bf16 %v903_v24, %v899_v40  ;;  %v908_v51 = vld [vmem:[%s4781_s2 + $0x148] sm:$0xff] }
 0x158   :  { %753 = vmatmul.mubr.f32.vlgmr.msra.gmra.mrb[2].mxu0 %v4034_v48  ;;  %824 = vmatmul.mubr.f32.vlgmr.msra.gmra.mrb[18].mxu1 %v4034_v48 }
 0x159   :  { %2793 = vmatpush1.bf16.msra.mxu1 %v3834_v43  ;;  %995 = vmatprep.mubr.f32.mxu0 %v3367_v3 }
 0x15a   :  { %2795 = vmatprep.subr.bf16.mxu1 %v3837_v45  ;;  %1066 = vmatprep.mubr.f32.mxu1 %v3367_v3 }
 0x15d   :  { %2797 = vmatpush1.bf16.msra.mxu1 %v3855_v49 }
 0x15e   :  { %2799 = vmatprep.subr.bf16.mxu1 %v3858_v50 }
 0x161   :  { %2801 = vmatpush1.bf16.msra.mxu1 %v3875_v54 }
 0x162   :  { %2803 = vmatprep.subr.bf16.mxu1 %v3878_v55 }
 0x165   :  { %2805 = vmatpush1.bf16.msra.mxu1 %v3895_v9 }
 0x166   :  { %2807 = vmatprep.subr.bf16.mxu1 %v3898_v61 }
 0x169   :  { %2809 = vmatpush1.bf16.msra.mxu1 %v3915_v13 }
 0x16a   :  { %2811 = vmatprep.subr.bf16.mxu1 %v3918_v4 }
 0x16d   :  { %2813 = vmatpush1.bf16.msra.mxu1 %v3935_v10 }
 0x16e   :  { %2815 = vmatprep.subr.bf16.mxu1 %v3938_v11 }
 0x171   :  { %2817 = vmatpush1.bf16.msra.mxu1 %v3955_v16 }
 0x172   :  { %2819 = vmatprep.subr.bf16.mxu1 %v3958_v17 }
 0x175   :  { %2821 = vmatpush1.bf16.msra.mxu1 %v3969_v44  ;;  %v871_v44 = vld [vmem:[%s4781_s2 + $0x20] sm:$0xff] }
 0x176   :  { %2855 = vmatprep.subr.bf16.mxu1 %v3816_v38  ;;  %v4070_v22 = vpack.c.bf16 %v871_v44, %v867_v63  ;;  %v876_v38 = vld [vmem:[%s4781_s2 + $0x48] sm:$0xff]  ;;  %v4155_v63 = vpack.c.bf16 %v912_v58, %v908_v51  ;;  %v911_v44 = vld [vmem:[%s4781_s2 + $0x160] sm:$0xff] }
 0x177   :  { %v4080_v26 = vpack.c.bf16 %v880_v7, %v876_v38  ;;  %v916_v38 = vld [vmem:[%s4781_s2 + $0x188] sm:$0xff]  ;;  %v4166_v12 = vpack.c.bf16 %v911_v44, %v907_v56 }
 0x178   :  { %2761 = vmatpush1.bf16.msra.mxu0 %v4070_v22  ;;  %v920_v7 = vld [vmem:[%s4781_s2 + $0x1a8] sm:$0xff] }
 0x179   :  { %2763 = vmatprep.subr.bf16.mxu0 %v4080_v26  ;;  %v4168_v14 = vpack.c.bf16 %v920_v7, %v916_v38 }
 0x17c   :  { %2765 = vmatpush1.bf16.msra.mxu0 %v4088_v18 }
 0x17d   :  { %2767 = vmatprep.subr.bf16.mxu0 %v4098_v23 }
 0x180   :  { %2769 = vmatpush1.bf16.msra.mxu0 %v4106_v31 }
 0x181   :  { %2771 = vmatprep.subr.bf16.mxu0 %v4116_v32 }
 0x184   :  { %2773 = vmatpush1.bf16.msra.mxu0 %v4124_v21 }
 0x185   :  { %2775 = vmatprep.subr.bf16.mxu0 %v4134_v15 }
 0x188   :  { %2777 = vmatpush1.bf16.msra.mxu0 %v4142_v34 }
 0x189   :  { %2779 = vmatprep.subr.bf16.mxu0 %v4155_v63 }
 0x18c   :  { %2781 = vmatpush1.bf16.msra.mxu0 %v4166_v12 }
 0x18d   :  { %2783 = vmatprep.subr.bf16.mxu0 %v4168_v14 }
 0x190   :  { %2785 = vmatpush1.bf16.msra.mxu0 %v4184_v52 }
 0x191   :  { %2787 = vmatprep.subr.bf16.mxu0 %v4187_v57 }
 0x194   :  { %2789 = vmatpush1.bf16.msra.mxu0 %v4196_v33 }
 0x195   :  { %2823 = vmatprep.subr.bf16.mxu0 %v4062_v62 }
 0x22b   :  { %v754_v36 = vpop.f32.mrb[2].mxu0  ;;  %v825_v40 = vpop.f32.mrb[18].mxu1 }
 0x22c   :  { %v830_v24 = vadd.f32 %v754_v36, %v3997_v37  ;;  %v756_v51 = vpop.f32.mrb[3].mxu0  ;;  %v827_v58 = vpop.f32.mrb[19].mxu1  ;;  %v3208_v19 = vadd.f32 %v825_v40, %v4025_v27 }
 0x22d   :  { %v831_v56 = vadd.f32 %v756_v51, %v3999_v20  ;;  %v3209_v7 = vadd.f32 %v827_v58, %v4027_v30 }
 0x22e   :  { %v2476_v44 = vmul.f32 -1.442695, %v830_v24 }
 0x22f   :  { %v2477_v38 = vmul.f32 -1.442695, %v831_v56  ;;  %v2478_v39 = vmul.f32 -1.442695, %v3209_v7 }
 0x230   :  { %3255 = vpow2.f32 %v2476_v44 }
 0x231   :  { %3257 = vpow2.f32 %v2477_v38 }
 0x232   :  { %3259 = vpow2.f32 %v2478_v39 }
 0x233   :  { %3261 = vtanh.f32 %v3208_v19 }
 0x23a   :  { %v3256_v25 = vpop.eup %3255 }
 0x23b   :  { %v3258_v28 = vpop.eup %3257  ;;  %v837_v0 = vadd.f32 1.0, %v3256_v25 }
 0x23c   :  { %v843_v6 = vadd.f32 1.0, %v3258_v28  ;;  %v3260_v37 = vpop.eup %3259 }
 0x23d   :  { %3263 = vrcp.f32 %v837_v0  ;;  %v3262_v36 = vpop.eup %3261  ;;  %v850_v56 = vadd.f32 1.0, %v3260_v37 }
 0x23e   :  { %3265 = vrcp.f32 %v843_v6 }
 0x23f   :  { %3267 = vrcp.f32 %v850_v56 }
 0x247   :  { %v3264_v20 = vpop.eup %3263 }
 0x248   :  { %v3266_v24 = vpop.eup %3265  ;;  %v854_v51 = vmul.f32 %v3264_v20, %v3262_v36 }
 0x249   :  { %v853_v44 = vmul.f32 %v3266_v24, %v4031_v46  ;;  %v3268_v40 = vpop.eup %3267 }
 0x24b   :  { %v4206_v58 = vadd.f32 %v854_v51, %v853_v44  ;;  %v1356_v44 = vld [vmem:[%s4781_s2 + $0x18] sm:$0xff] }
 0x24d   :  { %3269 = vtanh.f32 %v4206_v58 }
 0x257   :  { %v3270_v38 = vpop.eup %3269 }
 0x258   :  { %v4209_v7 = vmul.f32 %v3270_v38, %v3268_v40  ;;  %v1355_v38 = vld [vmem:[%s4781_s2 + $0x10] sm:$0xff] }
 0x25a   :  { %996 = vmatmul.mubr.f32.vlgmr.msra.gmra.mrb[4].mxu0 %v4209_v7  ;;  %1067 = vmatmul.mubr.f32.vlgmr.msra.gmra.mrb[20].mxu1 %v4209_v7 }
 0x25b   :  { %2825 = vmatpush1.bf16.msra.mxu0 %v4070_v22  ;;  %2857 = vmatpush1.bf16.msra.mxu1 %v3834_v43  ;;  %v1168_v43 = vld [vmem:[%s4781_s2 + $0x1d0] sm:$0xff] }
 0x25c   :  { %2827 = vmatprep.subr.bf16.mxu0 %v4080_v26  ;;  %2859 = vmatprep.subr.bf16.mxu1 %v3837_v45  ;;  %v1172_v45 = vld [vmem:[%s4781_s2 + $0x1f0] sm:$0xff] }
 0x25d   :  { %1238 = vmatprep.mubr.f32.mxu0 %v3367_v3  ;;  %1309 = vmatprep.mubr.f32.mxu1 %v3367_v3 }
 0x25f   :  { %2829 = vmatpush1.bf16.msra.mxu0 %v4088_v18  ;;  %2861 = vmatpush1.bf16.msra.mxu1 %v3855_v49  ;;  %v4251_v49 = vpack.c.bf16 %v1172_v45, %v1168_v43  ;;  %v1359_v43 = vld [vmem:[%s4781_s2 + $0x30] sm:$0xff] }
 0x260   :  { %2831 = vmatprep.subr.bf16.mxu0 %v4098_v23  ;;  %2863 = vmatprep.subr.bf16.mxu1 %v3858_v50  ;;  %v4298_v45 = vpack.c.bf16 %v1359_v43, %v1355_v38  ;;  %v1399_v43 = vld [vmem:[%s4781_s2 + $0x170] sm:$0xff] }
 0x263   :  { %2833 = vmatpush1.bf16.msra.mxu0 %v4106_v31  ;;  %2865 = vmatpush1.bf16.msra.mxu1 %v3875_v54 }
 0x264   :  { %2835 = vmatprep.subr.bf16.mxu0 %v4116_v32  ;;  %2867 = vmatprep.subr.bf16.mxu1 %v3878_v55 }
 0x267   :  { %2837 = vmatpush1.bf16.msra.mxu0 %v4124_v21  ;;  %2869 = vmatpush1.bf16.msra.mxu1 %v3895_v9 }
 0x268   :  { %2839 = vmatprep.subr.bf16.mxu0 %v4134_v15  ;;  %2871 = vmatprep.subr.bf16.mxu1 %v3898_v61 }
 0x26b   :  { %2841 = vmatpush1.bf16.msra.mxu0 %v4142_v34  ;;  %2873 = vmatpush1.bf16.msra.mxu1 %v3915_v13 }
 0x26c   :  { %2843 = vmatprep.subr.bf16.mxu0 %v4155_v63  ;;  %2875 = vmatprep.subr.bf16.mxu1 %v3918_v4 }
 0x26f   :  { %2845 = vmatpush1.bf16.msra.mxu0 %v4166_v12  ;;  %2877 = vmatpush1.bf16.msra.mxu1 %v3935_v10 }
 0x270   :  { %2847 = vmatprep.subr.bf16.mxu0 %v4168_v14  ;;  %2879 = vmatprep.subr.bf16.mxu1 %v3938_v11 }
 0x273   :  { %2849 = vmatpush1.bf16.msra.mxu0 %v4184_v52  ;;  %2881 = vmatpush1.bf16.msra.mxu1 %v3955_v16 }
 0x274   :  { %2851 = vmatprep.subr.bf16.mxu0 %v4187_v57  ;;  %2883 = vmatprep.subr.bf16.mxu1 %v3958_v17 }
 0x277   :  { %2853 = vmatpush1.bf16.msra.mxu0 %v4196_v33  ;;  %2885 = vmatpush1.bf16.msra.mxu1 %v4251_v49 }
 0x278   :  { %2887 = vmatprep.subr.bf16.mxu0 %v4062_v62 }
 0x32d   :  { %v997_v50 = vpop.f32.mrb[4].mxu0  ;;  %v1068_v54 = vpop.f32.mrb[20].mxu1 }
 0x32e   :  { %v1073_v55 = vadd.f32 %v997_v50, %v4001_v42  ;;  %v999_v9 = vpop.f32.mrb[5].mxu0  ;;  %v1070_v61 = vpop.f32.mrb[21].mxu1  ;;  %v3210_v17 = vadd.f32 %v1068_v54, %v4025_v27  ;;  %v1368_v50 = vld [vmem:[%s4781_s2 + $0x78] sm:$0xff] }
 0x32f   :  { %v1074_v13 = vadd.f32 %v999_v9, %v4003_v29  ;;  %v3211_v11 = vadd.f32 %v1070_v61, %v4027_v30  ;;  %v1367_v9 = vld [vmem:[%s4781_s2 + $0x70] sm:$0xff] }
 0x330   :  { %v2479_v4 = vmul.f32 -1.442695, %v1073_v55  ;;  %v1363_v55 = vld [vmem:[%s4781_s2 + $0x50] sm:$0xff] }
 0x331   :  { %v2480_v10 = vmul.f32 -1.442695, %v1074_v13  ;;  %v2481_v16 = vmul.f32 -1.442695, %v3211_v11  ;;  %v4316_v61 = vpack.c.bf16 %v1367_v9, %v1363_v55  ;;  %v1372_v13 = vld [vmem:[%s4781_s2 + $0x98] sm:$0xff]  ;;  %v1371_v11 = vld [vmem:[%s4781_s2 + $0x90] sm:$0xff] }
 0x332   :  { %3271 = vpow2.f32 %v2479_v4  ;;  %v1376_v4 = vld [vmem:[%s4781_s2 + $0xb8] sm:$0xff] }
 0x333   :  { %3273 = vpow2.f32 %v2480_v10  ;;  %v4326_v10 = vpack.c.bf16 %v1376_v4, %v1372_v13  ;;  %v1403_v13 = vld [vmem:[%s4781_s2 + $0x190] sm:$0xff] }
 0x334   :  { %3275 = vpow2.f32 %v2481_v16  ;;  %v1375_v16 = vld [vmem:[%s4781_s2 + $0xb0] sm:$0xff] }
 0x335   :  { %3277 = vtanh.f32 %v3210_v17  ;;  %v4334_v17 = vpack.c.bf16 %v1375_v16, %v1371_v11  ;;  %v1407_v4 = vld [vmem:[%s4781_s2 + $0x1b0] sm:$0xff]  ;;  %v1412_v11 = vld [vmem:[%s4781_s2 + $0x1d8] sm:$0xff] }
 0x336   :  { %v1416_v16 = vld [vmem:[%s4781_s2 + $0x1f8] sm:$0xff] }
 0x33c   :  { %v3272_v46 = vpop.eup %3271 }
 0x33d   :  { %v3274_v39 = vpop.eup %3273  ;;  %v1080_v19 = vadd.f32 1.0, %v3272_v46  ;;  %v1380_v46 = vld [vmem:[%s4781_s2 + $0xd8] sm:$0xff] }
 0x33e   :  { %v1086_v25 = vadd.f32 1.0, %v3274_v39  ;;  %v3276_v42 = vpop.eup %3275  ;;  %v1384_v39 = vld [vmem:[%s4781_s2 + $0xf8] sm:$0xff] }
 0x33f   :  { %3279 = vrcp.f32 %v1080_v19  ;;  %v3278_v28 = vpop.eup %3277  ;;  %v1093_v37 = vadd.f32 1.0, %v3276_v42  ;;  %v4344_v19 = vpack.c.bf16 %v1384_v39, %v1380_v46  ;;  %v1383_v42 = vld [vmem:[%s4781_s2 + $0xf0] sm:$0xff]  ;;  %v4412_v46 = vpack.c.bf16 %v1407_v4, %v1403_v13 }
 0x340   :  { %3281 = vrcp.f32 %v1086_v25  ;;  %v1379_v25 = vld [vmem:[%s4781_s2 + $0xd0] sm:$0xff]  ;;  %v4415_v39 = vpack.c.bf16 %v1416_v16, %v1412_v11 }
 0x341   :  { %3283 = vrcp.f32 %v1093_v37  ;;  %v1387_v37 = vld [vmem:[%s4781_s2 + $0x110] sm:$0xff] }
 0x349   :  { %v3280_v29 = vpop.eup %3279 }
 0x34a   :  { %v3282_v0 = vpop.eup %3281  ;;  %v1097_v6 = vmul.f32 %v3280_v29, %v3278_v28  ;;  %v4352_v28 = vpack.c.bf16 %v1383_v42, %v1379_v25  ;;  %v1388_v29 = vld [vmem:[%s4781_s2 + $0x118] sm:$0xff] }
 0x34b   :  { %v1096_v36 = vmul.f32 %v3282_v0, %v4206_v58  ;;  %v3284_v24 = vpop.eup %3283  ;;  %v1360_v58 = vld [vmem:[%s4781_s2 + $0x38] sm:$0xff] }
 0x34c   :  { %v4290_v40 = vpack.c.bf16 %v1360_v58, %v1356_v44  ;;  %v1392_v0 = vld [vmem:[%s4781_s2 + $0x138] sm:$0xff]  ;;  %v1395_v58 = vld [vmem:[%s4781_s2 + $0x150] sm:$0xff] }
 0x34d   :  { %v4259_v20 = vadd.f32 %v1097_v6, %v1096_v36  ;;  %v4362_v6 = vpack.c.bf16 %v1392_v0, %v1388_v29  ;;  %v1391_v36 = vld [vmem:[%s4781_s2 + $0x130] sm:$0xff]  ;;  %v1400_v44 = vld [vmem:[%s4781_s2 + $0x178] sm:$0xff]  ;;  %v4394_v55 = vpack.c.bf16 %v1399_v43, %v1395_v58 }
 0x34e   :  { %2919 = vmatprep.subr.bf16.mxu1 %v4290_v40 }
 0x34f   :  { %3285 = vtanh.f32 %v4259_v20 }
 0x359   :  { %v3286_v51 = vpop.eup %3285 }
 0x35a   :  { %v4262_v56 = vmul.f32 %v3286_v51, %v3284_v24  ;;  %v4370_v24 = vpack.c.bf16 %v1391_v36, %v1387_v37  ;;  %v1396_v51 = vld [vmem:[%s4781_s2 + $0x158] sm:$0xff] }
 0x35b   :  { %v4383_v38 = vpack.c.bf16 %v1400_v44, %v1396_v51 }
 0x35c   :  { %1239 = vmatmul.mubr.f32.vlgmr.msra.gmra.mrb[6].mxu0 %v4262_v56  ;;  %1310 = vmatmul.mubr.f32.vlgmr.msra.gmra.mrb[22].mxu1 %v4262_v56 }
 0x35d   :  { %2889 = vmatpush1.bf16.msra.mxu0 %v4070_v22  ;;  %1481 = vmatprep.mubr.f32.mxu0 %v3367_v3 }
 0x35e   :  { %2891 = vmatprep.subr.bf16.mxu0 %v4080_v26  ;;  %1552 = vmatprep.mubr.f32.mxu1 %v3367_v3 }
 0x35f   :  { %2921 = vmatpush1.bf16.msra.mxu1 %v4298_v45 }
 0x361   :  { %2893 = vmatpush1.bf16.msra.mxu0 %v4088_v18 }
 0x362   :  { %2895 = vmatprep.subr.bf16.mxu0 %v4098_v23 }
 0x365   :  { %2897 = vmatpush1.bf16.msra.mxu0 %v4106_v31 }
 0x366   :  { %2899 = vmatprep.subr.bf16.mxu0 %v4116_v32 }
 0x369   :  { %2901 = vmatpush1.bf16.msra.mxu0 %v4124_v21 }
 0x36a   :  { %2903 = vmatprep.subr.bf16.mxu0 %v4134_v15 }
 0x36d   :  { %2905 = vmatpush1.bf16.msra.mxu0 %v4142_v34 }
 0x36e   :  { %2907 = vmatprep.subr.bf16.mxu0 %v4155_v63 }
 0x371   :  { %2909 = vmatpush1.bf16.msra.mxu0 %v4166_v12 }
 0x372   :  { %2911 = vmatprep.subr.bf16.mxu0 %v4168_v14 }
 0x375   :  { %2913 = vmatpush1.bf16.msra.mxu0 %v4184_v52 }
 0x376   :  { %2915 = vmatprep.subr.bf16.mxu0 %v4187_v57 }
 0x379   :  { %2917 = vmatpush1.bf16.msra.mxu0 %v4196_v33 }
 0x37a   :  { %2951 = vmatprep.subr.bf16.mxu0 %v4062_v62  ;;  %v1364_v62 = vld [vmem:[%s4781_s2 + $0x58] sm:$0xff] }
 0x37b   :  { %v4308_v54 = vpack.c.bf16 %v1368_v50, %v1364_v62  ;;  %v1404_v62 = vld [vmem:[%s4781_s2 + $0x198] sm:$0xff] }
 0x37c   :  { %v1408_v50 = vld [vmem:[%s4781_s2 + $0x1b8] sm:$0xff] }
 0x37d   :  { %2923 = vmatprep.subr.bf16.mxu1 %v4308_v54  ;;  %v4396_v9 = vpack.c.bf16 %v1408_v50, %v1404_v62 }
 0x37e   :  { %2925 = vmatpush1.bf16.msra.mxu1 %v4316_v61 }
 0x37f   :  { %2927 = vmatprep.subr.bf16.mxu1 %v4326_v10 }
 0x382   :  { %2929 = vmatpush1.bf16.msra.mxu1 %v4334_v17 }
 0x383   :  { %2931 = vmatprep.subr.bf16.mxu1 %v4344_v19 }
 0x386   :  { %2933 = vmatpush1.bf16.msra.mxu1 %v4352_v28 }
 0x387   :  { %2935 = vmatprep.subr.bf16.mxu1 %v4362_v6 }
 0x38a   :  { %2937 = vmatpush1.bf16.msra.mxu1 %v4370_v24 }
 0x38b   :  { %2939 = vmatprep.subr.bf16.mxu1 %v4383_v38 }
 0x38e   :  { %2941 = vmatpush1.bf16.msra.mxu1 %v4394_v55 }
 0x38f   :  { %2943 = vmatprep.subr.bf16.mxu1 %v4396_v9 }
 0x392   :  { %2945 = vmatpush1.bf16.msra.mxu1 %v4412_v46 }
 0x393   :  { %2947 = vmatprep.subr.bf16.mxu1 %v4415_v39 }
 0x396   :  { %2949 = vmatpush1.bf16.msra.mxu1 %v4251_v49 }
 0x397   :  { %2983 = vmatprep.subr.bf16.mxu1 %v4290_v40 }
 0x42f   :  { %v1240_v25 = vpop.f32.mrb[6].mxu0  ;;  %v1311_v42 = vpop.f32.mrb[22].mxu1 }
 0x430   :  { %v1316_v29 = vadd.f32 %v1240_v25, %v4005_v47  ;;  %v1242_v0 = vpop.f32.mrb[7].mxu0  ;;  %v1313_v37 = vpop.f32.mrb[23].mxu1  ;;  %v3212_v62 = vadd.f32 %v1311_v42, %v4025_v27 }
 0x431   :  { %v1317_v36 = vadd.f32 %v1242_v0, %v4007_v41  ;;  %v3213_v58 = vadd.f32 %v1313_v37, %v4027_v30 }
 0x432   :  { %v2482_v51 = vmul.f32 -1.442695, %v1316_v29 }
 0x433   :  { %v2483_v44 = vmul.f32 -1.442695, %v1317_v36  ;;  %v2484_v43 = vmul.f32 -1.442695, %v3213_v58 }
 0x434   :  { %3287 = vpow2.f32 %v2482_v51 }
 0x435   :  { %3289 = vpow2.f32 %v2483_v44 }
 0x436   :  { %3291 = vpow2.f32 %v2484_v43 }
 0x437   :  { %3293 = vtanh.f32 %v3212_v62 }
 0x43e   :  { %v3288_v50 = vpop.eup %3287 }
 0x43f   :  { %v3290_v13 = vpop.eup %3289  ;;  %v1323_v4 = vadd.f32 1.0, %v3288_v50 }
 0x440   :  { %v1329_v11 = vadd.f32 1.0, %v3290_v13  ;;  %v3292_v47 = vpop.eup %3291 }
 0x441   :  { %3295 = vrcp.f32 %v1323_v4  ;;  %v3294_v16 = vpop.eup %3293  ;;  %v1336_v0 = vadd.f32 1.0, %v3292_v47 }
 0x442   :  { %3297 = vrcp.f32 %v1329_v11 }
 0x443   :  { %3299 = vrcp.f32 %v1336_v0  ;;  %v1843_v0 = vld [vmem:[%s4781_s2 + $0x20] sm:$0xff] }
 0x44b   :  { %v3296_v41 = vpop.eup %3295 }
 0x44c   :  { %v3298_v25 = vpop.eup %3297  ;;  %v1340_v29 = vmul.f32 %v3296_v41, %v3294_v16  ;;  %v1840_v16 = vld [vmem:[%s4781_s2 + $0x8] sm:$0xff] }
 0x44d   :  { %v1339_v36 = vmul.f32 %v3298_v25, %v4259_v20  ;;  %v3300_v42 = vpop.eup %3299  ;;  %v1844_v41 = vld [vmem:[%s4781_s2 + $0x28] sm:$0xff] }
 0x44e   :  { %v3014_v25 = vpack.c.bf16 %v1844_v41, %v1840_v16  ;;  %v1888_v16 = vld [vmem:[%s4781_s2 + $0x188] sm:$0xff] }
 0x44f   :  { %v4426_v37 = vadd.f32 %v1340_v29, %v1339_v36  ;;  %v1839_v29 = vld [vmem:[%s4781_s2] sm:$0xff]  ;;  %v1852_v36 = vld [vmem:[%s4781_s2 + $0x68] sm:$0xff] }
 0x450   :  { %v1892_v41 = vld [vmem:[%s4781_s2 + $0x1a8] sm:$0xff] }
 0x451   :  { %3301 = vtanh.f32 %v4426_v37 }
 0x45b   :  { %v3302_v51 = vpop.eup %3301 }
 0x45c   :  { %v4429_v44 = vmul.f32 %v3302_v51, %v3300_v42  ;;  %v1847_v42 = vld [vmem:[%s4781_s2 + $0x40] sm:$0xff] }
 0x45d   :  { %v1851_v51 = vld [vmem:[%s4781_s2 + $0x60] sm:$0xff] }
 0x45e   :  { %1482 = vmatmul.mubr.f32.vlgmr.msra.gmra.mrb[8].mxu0 %v4429_v44  ;;  %1553 = vmatmul.mubr.f32.vlgmr.msra.gmra.mrb[24].mxu1 %v4429_v44 }
 0x45f   :  { %2953 = vmatpush1.bf16.msra.mxu0 %v4070_v22  ;;  %2985 = vmatpush1.bf16.msra.mxu1 %v4298_v45 }
 0x460   :  { %2955 = vmatprep.subr.bf16.mxu0 %v4080_v26  ;;  %2987 = vmatprep.subr.bf16.mxu1 %v4308_v54 }
 0x461   :  { %1724 = vmatprep.mubr.f32.mxu0 %v3367_v3  ;;  %1795 = vmatprep.mubr.f32.mxu1 %v3367_v3 }
 0x463   :  { %2957 = vmatpush1.bf16.msra.mxu0 %v4088_v18  ;;  %2989 = vmatpush1.bf16.msra.mxu1 %v4316_v61 }
 0x464   :  { %2959 = vmatprep.subr.bf16.mxu0 %v4098_v23  ;;  %2991 = vmatprep.subr.bf16.mxu1 %v4326_v10 }
 0x467   :  { %2961 = vmatpush1.bf16.msra.mxu0 %v4106_v31  ;;  %2993 = vmatpush1.bf16.msra.mxu1 %v4334_v17 }
 0x468   :  { %2963 = vmatprep.subr.bf16.mxu0 %v4116_v32  ;;  %2995 = vmatprep.subr.bf16.mxu1 %v4344_v19 }
 0x46b   :  { %2965 = vmatpush1.bf16.msra.mxu0 %v4124_v21  ;;  %2997 = vmatpush1.bf16.msra.mxu1 %v4352_v28 }
 0x46c   :  { %2967 = vmatprep.subr.bf16.mxu0 %v4134_v15  ;;  %2999 = vmatprep.subr.bf16.mxu1 %v4362_v6 }
 0x46f   :  { %2969 = vmatpush1.bf16.msra.mxu0 %v4142_v34  ;;  %3001 = vmatpush1.bf16.msra.mxu1 %v4370_v24 }
 0x470   :  { %2971 = vmatprep.subr.bf16.mxu0 %v4155_v63  ;;  %3003 = vmatprep.subr.bf16.mxu1 %v4383_v38 }
 0x473   :  { %2973 = vmatpush1.bf16.msra.mxu0 %v4166_v12  ;;  %3005 = vmatpush1.bf16.msra.mxu1 %v4394_v55 }
 0x474   :  { %2975 = vmatprep.subr.bf16.mxu0 %v4168_v14  ;;  %3007 = vmatprep.subr.bf16.mxu1 %v4396_v9 }
 0x477   :  { %2977 = vmatpush1.bf16.msra.mxu0 %v4184_v52  ;;  %3009 = vmatpush1.bf16.msra.mxu1 %v4412_v46 }
 0x478   :  { %2979 = vmatprep.subr.bf16.mxu0 %v4187_v57  ;;  %3011 = vmatprep.subr.bf16.mxu1 %v4415_v39 }
 0x47b   :  { %2981 = vmatpush1.bf16.msra.mxu0 %v4196_v33  ;;  %3013 = vmatpush1.bf16.msra.mxu1 %v4251_v49 }
 0x47c   :  { %3047 = vmatprep.subr.bf16.mxu1 %v4290_v40  ;;  %3015 = vmatprep.subr.bf16.mxu0 %v3014_v25 }
 0x531   :  { %v1483_v22 = vpop.f32.mrb[8].mxu0  ;;  %v1554_v26 = vpop.f32.mrb[24].mxu1 }
 0x532   :  { %v1559_v18 = vadd.f32 %v1483_v22, %v4009_v53  ;;  %v1485_v23 = vpop.f32.mrb[9].mxu0  ;;  %v1556_v31 = vpop.f32.mrb[25].mxu1  ;;  %v3214_v12 = vadd.f32 %v1554_v26, %v4025_v27  ;;  %v4525_v22 = vpack.c.bf16 %v1851_v51, %v1847_v42  ;;  %v1856_v26 = vld [vmem:[%s4781_s2 + $0x88] sm:$0xff] }
 0x533   :  { %v1560_v32 = vadd.f32 %v1485_v23, %v4011_v59  ;;  %v3215_v34 = vadd.f32 %v1556_v31, %v4027_v30  ;;  %v1855_v31 = vld [vmem:[%s4781_s2 + $0x80] sm:$0xff]  ;;  %v1896_v42 = vld [vmem:[%s4781_s2 + $0x1c8] sm:$0xff] }
 0x534   :  { %v2485_v21 = vmul.f32 -1.442695, %v1559_v18  ;;  %v1860_v18 = vld [vmem:[%s4781_s2 + $0xa8] sm:$0xff] }
 0x535   :  { %v2486_v15 = vmul.f32 -1.442695, %v1560_v32  ;;  %v2487_v63 = vmul.f32 -1.442695, %v3215_v34  ;;  %v4535_v23 = vpack.c.bf16 %v1860_v18, %v1856_v26  ;;  %v1859_v32 = vld [vmem:[%s4781_s2 + $0xa0] sm:$0xff]  ;;  %v1868_v34 = vld [vmem:[%s4781_s2 + $0xe8] sm:$0xff] }
 0x536   :  { %3303 = vpow2.f32 %v2485_v21  ;;  %v4543_v21 = vpack.c.bf16 %v1859_v32, %v1855_v31  ;;  %v1900_v51 = vld [vmem:[%s4781_s2 + $0x1e8] sm:$0xff]  ;;  %v1895_v31 = vld [vmem:[%s4781_s2 + $0x1c0] sm:$0xff] }
 0x537   :  { %3305 = vpow2.f32 %v2486_v15  ;;  %v1864_v15 = vld [vmem:[%s4781_s2 + $0xc8] sm:$0xff]  ;;  %v4624_v18 = vpack.c.bf16 %v1900_v51, %v1896_v42  ;;  %v1899_v32 = vld [vmem:[%s4781_s2 + $0x1e0] sm:$0xff] }
 0x538   :  { %3307 = vpow2.f32 %v2487_v63  ;;  %v4553_v63 = vpack.c.bf16 %v1868_v34, %v1864_v15  ;;  %v4633_v15 = vpack.c.bf16 %v1899_v32, %v1895_v31 }
 0x539   :  { %3309 = vtanh.f32 %v3214_v12  ;;  %v1863_v12 = vld [vmem:[%s4781_s2 + $0xc0] sm:$0xff] }
 0x540   :  { %v3304_v14 = vpop.eup %3303 }
 0x541   :  { %v3306_v52 = vpop.eup %3305  ;;  %v1566_v57 = vadd.f32 1.0, %v3304_v14  ;;  %v1867_v14 = vld [vmem:[%s4781_s2 + $0xe0] sm:$0xff] }
 0x542   :  { %v1572_v33 = vadd.f32 1.0, %v3306_v52  ;;  %v3308_v53 = vpop.eup %3307  ;;  %v4561_v52 = vpack.c.bf16 %v1867_v14, %v1863_v12 }
 0x543   :  { %3311 = vrcp.f32 %v1566_v57  ;;  %v3310_v20 = vpop.eup %3309  ;;  %v1579_v62 = vadd.f32 1.0, %v3308_v53  ;;  %v1872_v57 = vld [vmem:[%s4781_s2 + $0x108] sm:$0xff] }
 0x544   :  { %3313 = vrcp.f32 %v1572_v33  ;;  %v1876_v33 = vld [vmem:[%s4781_s2 + $0x128] sm:$0xff] }
 0x545   :  { %3315 = vrcp.f32 %v1579_v62  ;;  %v4571_v53 = vpack.c.bf16 %v1876_v33, %v1872_v57  ;;  %v1884_v62 = vld [vmem:[%s4781_s2 + $0x168] sm:$0xff] }
 0x54d   :  { %v3312_v59 = vpop.eup %3311 }
 0x54e   :  { %v3314_v58 = vpop.eup %3313  ;;  %v1583_v43 = vmul.f32 %v3312_v59, %v3310_v20  ;;  %v1871_v20 = vld [vmem:[%s4781_s2 + $0x100] sm:$0xff] }
 0x54f   :  { %v1582_v50 = vmul.f32 %v3314_v58, %v4426_v37  ;;  %v3316_v4 = vpop.eup %3315  ;;  %v1875_v59 = vld [vmem:[%s4781_s2 + $0x120] sm:$0xff] }
 0x550   :  { %v4579_v58 = vpack.c.bf16 %v1875_v59, %v1871_v20 }
 0x551   :  { %v4471_v13 = vadd.f32 %v1583_v43, %v1582_v50  ;;  %v1880_v43 = vld [vmem:[%s4781_s2 + $0x148] sm:$0xff]  ;;  %v1879_v50 = vld [vmem:[%s4781_s2 + $0x140] sm:$0xff] }
 0x553   :  { %3317 = vtanh.f32 %v4471_v13 }
 0x55d   :  { %v3318_v11 = vpop.eup %3317 }
 0x55e   :  { %v4474_v47 = vmul.f32 %v3318_v11, %v3316_v4  ;;  %v4592_v4 = vpack.c.bf16 %v1884_v62, %v1880_v43  ;;  %v1883_v11 = vld [vmem:[%s4781_s2 + $0x160] sm:$0xff] }
 0x560   :  { %1725 = vmatmul.mubr.f32.vlgmr.msra.gmra.mrb[10].mxu0 %v4474_v47  ;;  %1796 = vmatmul.mubr.f32.vlgmr.msra.gmra.mrb[26].mxu1 %v4474_v47 }
 0x561   :  { %3049 = vmatpush1.bf16.msra.mxu1 %v4298_v45  ;;  %1967 = vmatprep.mubr.f32.mxu0 %v3367_v3 }
 0x562   :  { %3051 = vmatprep.subr.bf16.mxu1 %v4308_v54  ;;  %2038 = vmatprep.mubr.f32.mxu1 %v3367_v3 }
 0x565   :  { %3053 = vmatpush1.bf16.msra.mxu1 %v4316_v61 }
 0x566   :  { %3055 = vmatprep.subr.bf16.mxu1 %v4326_v10 }
 0x569   :  { %3057 = vmatpush1.bf16.msra.mxu1 %v4334_v17 }
 0x56a   :  { %3059 = vmatprep.subr.bf16.mxu1 %v4344_v19 }
 0x56d   :  { %3061 = vmatpush1.bf16.msra.mxu1 %v4352_v28 }
 0x56e   :  { %3063 = vmatprep.subr.bf16.mxu1 %v4362_v6 }
 0x571   :  { %3065 = vmatpush1.bf16.msra.mxu1 %v4370_v24 }
 0x572   :  { %3067 = vmatprep.subr.bf16.mxu1 %v4383_v38 }
 0x575   :  { %3069 = vmatpush1.bf16.msra.mxu1 %v4394_v55 }
 0x576   :  { %3071 = vmatprep.subr.bf16.mxu1 %v4396_v9 }
 0x579   :  { %3073 = vmatpush1.bf16.msra.mxu1 %v4412_v46 }
 0x57a   :  { %3075 = vmatprep.subr.bf16.mxu1 %v4415_v39 }
 0x57d   :  { %3077 = vmatpush1.bf16.msra.mxu1 %v4251_v49  ;;  %v4508_v49 = vpack.c.bf16 %v1843_v0, %v1839_v29  ;;  %v4603_v29 = vpack.c.bf16 %v1883_v11, %v1879_v50  ;;  %v4605_v0 = vpack.c.bf16 %v1892_v41, %v1888_v16 }
 0x57e   :  { %3111 = vmatprep.subr.bf16.mxu1 %v4290_v40  ;;  %v1848_v40 = vld [vmem:[%s4781_s2 + $0x48] sm:$0xff] }
 0x57f   :  { %3017 = vmatpush1.bf16.msra.mxu0 %v4508_v49  ;;  %v4517_v37 = vpack.c.bf16 %v1852_v36, %v1848_v40  ;;  %v1887_v40 = vld [vmem:[%s4781_s2 + $0x180] sm:$0xff] }
 0x580   :  { %v1891_v36 = vld [vmem:[%s4781_s2 + $0x1a0] sm:$0xff] }
 0x581   :  { %3019 = vmatprep.subr.bf16.mxu0 %v4517_v37  ;;  %v4621_v26 = vpack.c.bf16 %v1891_v36, %v1887_v40 }
 0x583   :  { %3021 = vmatpush1.bf16.msra.mxu0 %v4525_v22 }
 0x584   :  { %3023 = vmatprep.subr.bf16.mxu0 %v4535_v23 }
 0x587   :  { %3025 = vmatpush1.bf16.msra.mxu0 %v4543_v21 }
 0x588   :  { %3027 = vmatprep.subr.bf16.mxu0 %v4553_v63 }
 0x58b   :  { %3029 = vmatpush1.bf16.msra.mxu0 %v4561_v52 }
 0x58c   :  { %3031 = vmatprep.subr.bf16.mxu0 %v4571_v53 }
 0x58f   :  { %3033 = vmatpush1.bf16.msra.mxu0 %v4579_v58 }
 0x590   :  { %3035 = vmatprep.subr.bf16.mxu0 %v4592_v4 }
 0x593   :  { %3037 = vmatpush1.bf16.msra.mxu0 %v4603_v29 }
 0x594   :  { %3039 = vmatprep.subr.bf16.mxu0 %v4605_v0 }
 0x597   :  { %3041 = vmatpush1.bf16.msra.mxu0 %v4621_v26 }
 0x598   :  { %3043 = vmatprep.subr.bf16.mxu0 %v4624_v18 }
 0x59b   :  { %3045 = vmatpush1.bf16.msra.mxu0 %v4633_v15 }
 0x59c   :  { %3079 = vmatprep.subr.bf16.mxu0 %v3014_v25 }
 0x633   :  { %v1726_v34 = vpop.f32.mrb[10].mxu0  ;;  %v1797_v12 = vpop.f32.mrb[26].mxu1 }
 0x634   :  { %v1802_v14 = vadd.f32 %v1726_v34, %v4013_v60  ;;  %v1728_v57 = vpop.f32.mrb[11].mxu0  ;;  %v1799_v33 = vpop.f32.mrb[27].mxu1  ;;  %v3216_v11 = vadd.f32 %v1797_v12, %v4025_v27 }
 0x635   :  { %v1803_v20 = vadd.f32 %v1728_v57, %v4015_v1  ;;  %v3217_v62 = vadd.f32 %v1799_v33, %v4027_v30 }
 0x636   :  { %v2488_v59 = vmul.f32 -1.442695, %v1802_v14 }
 0x637   :  { %v2489_v43 = vmul.f32 -1.442695, %v1803_v20  ;;  %v2490_v50 = vmul.f32 -1.442695, %v3217_v62 }
 0x638   :  { %3319 = vpow2.f32 %v2488_v59  ;;  %v2330_v59 = vld [vmem:[%s4784_s4 + $0x20] sm:$0xff] }
 0x639   :  { %3321 = vpow2.f32 %v2489_v43  ;;  %v2331_v43 = vld [vmem:[%s4784_s4 + $0x28] sm:$0xff] }
 0x63a   :  { %3323 = vpow2.f32 %v2490_v50  ;;  %v3150_v62 = vpack.c.bf16 %v2331_v43, %v2330_v59  ;;  %v2332_v50 = vld [vmem:[%s4784_s4 + $0x30] sm:$0xff] }
 0x63b   :  { %3325 = vtanh.f32 %v3216_v11  ;;  %v2333_v11 = vld [vmem:[%s4784_s4 + $0x38] sm:$0xff] }
 0x642   :  { %v3320_v16 = vpop.eup %3319 }
 0x643   :  { %v3322_v41 = vpop.eup %3321  ;;  %v1809_v25 = vadd.f32 1.0, %v3320_v16  ;;  %v3154_v16 = vpack.c.bf16 %v2333_v11, %v2332_v50 }
 0x644   :  { %v1815_v40 = vadd.f32 1.0, %v3322_v41  ;;  %v3324_v60 = vpop.eup %3323  ;;  %v2334_v41 = vld [vmem:[%s4784_s4 + $0x40] sm:$0xff] }
 0x645   :  { %3327 = vrcp.f32 %v1809_v25  ;;  %v3326_v36 = vpop.eup %3325  ;;  %v1822_v31 = vadd.f32 1.0, %v3324_v60  ;;  %v2337_v60 = vld [vmem:[%s4784_s4 + $0x58] sm:$0xff] }
 0x646   :  { %3329 = vrcp.f32 %v1815_v40  ;;  %v2336_v40 = vld [vmem:[%s4784_s4 + $0x50] sm:$0xff] }
 0x647   :  { %3331 = vrcp.f32 %v1822_v31  ;;  %v2340_v31 = vld [vmem:[%s4784_s4 + $0x70] sm:$0xff] }
 0x64f   :  { %v3328_v1 = vpop.eup %3327 }
 0x650   :  { %v3330_v42 = vpop.eup %3329  ;;  %v1826_v51 = vmul.f32 %v3328_v1, %v3326_v36  ;;  %v3162_v36 = vpack.c.bf16 %v2337_v60, %v2336_v40  ;;  %v2338_v1 = vld [vmem:[%s4784_s4 + $0x60] sm:$0xff] }
 0x651   :  { %v1825_v32 = vmul.f32 %v3330_v42, %v4471_v13  ;;  %v3332_v12 = vpop.eup %3331  ;;  %v2339_v42 = vld [vmem:[%s4784_s4 + $0x68] sm:$0xff] }
 0x653   :  { %v4642_v34 = vadd.f32 %v1826_v51, %v1825_v32  ;;  %v3166_v51 = vpack.c.bf16 %v2339_v42, %v2338_v1  ;;  %v2341_v32 = vld [vmem:[%s4784_s4 + $0x78] sm:$0xff] }
 0x655   :  { %3333 = vtanh.f32 %v4642_v34 }
 0x65f   :  { %v3334_v14 = vpop.eup %3333 }
 0x660   :  { %v4645_v57 = vmul.f32 %v3334_v14, %v3332_v12 }
 0x662   :  { %1968 = vmatmul.mubr.f32.vlgmr.msra.gmra.mrb[12].mxu0 %v4645_v57  ;;  %2039 = vmatmul.mubr.f32.vlgmr.msra.gmra.mrb[28].mxu1 %v4645_v57 }
 0x663   :  { %3081 = vmatpush1.bf16.msra.mxu0 %v4508_v49  ;;  %3113 = vmatpush1.bf16.msra.mxu1 %v4298_v45  ;;  %v2144_v45 = vld [vmem:[%s4781_s2 + $0x1f0] sm:$0xff] }
 0x664   :  { %3083 = vmatprep.subr.bf16.mxu0 %v4517_v37  ;;  %3115 = vmatprep.subr.bf16.mxu1 %v4308_v54 }
 0x665   :  { %2210 = vmatprep.mubr.f32.mxu0 %v3367_v3  ;;  %2281 = vmatprep.mubr.f32.mxu1 %v3367_v3  ;;  %v2140_v3 = vld [vmem:[%s4781_s2 + $0x1d0] sm:$0xff] }
 0x666   :  { %v3140_v54 = vpack.c.bf16 %v2144_v45, %v2140_v3 }
 0x667   :  { %3085 = vmatpush1.bf16.msra.mxu0 %v4525_v22  ;;  %3117 = vmatpush1.bf16.msra.mxu1 %v4316_v61  ;;  %v2326_v61 = vld [vmem:[%s4784_s4] sm:$0xff] }
 0x668   :  { %3087 = vmatprep.subr.bf16.mxu0 %v4535_v23  ;;  %3119 = vmatprep.subr.bf16.mxu1 %v4326_v10  ;;  %v2327_v10 = vld [vmem:[%s4784_s4 + $0x8] sm:$0xff] }
 0x66b   :  { %3089 = vmatpush1.bf16.msra.mxu0 %v4543_v21  ;;  %3121 = vmatpush1.bf16.msra.mxu1 %v4334_v17  ;;  %v3142_v17 = vpack.c.bf16 %v2327_v10, %v2326_v61 }
 0x66c   :  { %3091 = vmatprep.subr.bf16.mxu0 %v4553_v63  ;;  %3123 = vmatprep.subr.bf16.mxu1 %v4344_v19 }
 0x66f   :  { %3093 = vmatpush1.bf16.msra.mxu0 %v4561_v52  ;;  %3125 = vmatpush1.bf16.msra.mxu1 %v4352_v28 }
 0x670   :  { %3095 = vmatprep.subr.bf16.mxu0 %v4571_v53  ;;  %3127 = vmatprep.subr.bf16.mxu1 %v4362_v6 }
 0x673   :  { %3097 = vmatpush1.bf16.msra.mxu0 %v4579_v58  ;;  %3129 = vmatpush1.bf16.msra.mxu1 %v4370_v24 }
 0x674   :  { %3099 = vmatprep.subr.bf16.mxu0 %v4592_v4  ;;  %3131 = vmatprep.subr.bf16.mxu1 %v4383_v38 }
 0x677   :  { %3101 = vmatpush1.bf16.msra.mxu0 %v4603_v29  ;;  %3133 = vmatpush1.bf16.msra.mxu1 %v4394_v55 }
 0x678   :  { %3103 = vmatprep.subr.bf16.mxu0 %v4605_v0  ;;  %3135 = vmatprep.subr.bf16.mxu1 %v4396_v9  ;;  %v2328_v0 = vld [vmem:[%s4784_s4 + $0x10] sm:$0xff] }
 0x67b   :  { %3105 = vmatpush1.bf16.msra.mxu0 %v4621_v26  ;;  %3137 = vmatpush1.bf16.msra.mxu1 %v4412_v46  ;;  %v2329_v26 = vld [vmem:[%s4784_s4 + $0x18] sm:$0xff] }
 0x67c   :  { %3107 = vmatprep.subr.bf16.mxu0 %v4624_v18  ;;  %3139 = vmatprep.subr.bf16.mxu1 %v4415_v39  ;;  %v3146_v20 = vpack.c.bf16 %v2329_v26, %v2328_v0 }
 0x67f   :  { %3109 = vmatpush1.bf16.msra.mxu0 %v4633_v15  ;;  %3141 = vmatpush1.bf16.msra.mxu1 %v3140_v54 }
 0x680   :  { %3143 = vmatprep.subr.bf16.mxu0 %v3142_v17 }
 0x735   :  { %v1969_v19 = vpop.f32.mrb[12].mxu0  ;;  %v2040_v28 = vpop.f32.mrb[28].mxu1 }
 0x736   :  { %v2045_v6 = vadd.f32 %v1969_v19, %v4017_v2  ;;  %v1971_v24 = vpop.f32.mrb[13].mxu0  ;;  %v2042_v38 = vpop.f32.mrb[29].mxu1  ;;  %v3218_v49 = vadd.f32 %v2040_v28, %v4025_v27 }
 0x737   :  { %v2046_v55 = vadd.f32 %v1971_v24, %v4019_v5  ;;  %v3219_v39 = vadd.f32 %v2042_v38, %v4027_v30 }
 0x738   :  { %v2491_v9 = vmul.f32 -1.442695, %v2045_v6 }
 0x739   :  { %v2492_v46 = vmul.f32 -1.442695, %v2046_v55  ;;  %v2493_v13 = vmul.f32 -1.442695, %v3219_v39 }
 0x73a   :  { %3335 = vpow2.f32 %v2491_v9 }
 0x73b   :  { %3337 = vpow2.f32 %v2492_v46 }
 0x73c   :  { %3339 = vpow2.f32 %v2493_v13 }
 0x73d   :  { %3341 = vtanh.f32 %v3218_v49 }
 0x744   :  { %v3336_v37 = vpop.eup %3335 }
 0x745   :  { %v3338_v22 = vpop.eup %3337  ;;  %v2052_v23 = vadd.f32 1.0, %v3336_v37 }
 0x746   :  { %v2058_v21 = vadd.f32 1.0, %v3338_v22  ;;  %v3340_v2 = vpop.eup %3339 }
 0x747   :  { %3343 = vrcp.f32 %v2052_v23  ;;  %v3342_v63 = vpop.eup %3341  ;;  %v2065_v58 = vadd.f32 1.0, %v3340_v2 }
 0x748   :  { %3345 = vrcp.f32 %v2058_v21 }
 0x749   :  { %3347 = vrcp.f32 %v2065_v58 }
 0x751   :  { %v3344_v5 = vpop.eup %3343 }
 0x752   :  { %v3346_v52 = vpop.eup %3345  ;;  %v2069_v53 = vmul.f32 %v3344_v5, %v3342_v63 }
 0x753   :  { %v2068_v4 = vmul.f32 %v3346_v52, %v4642_v34  ;;  %v3348_v18 = vpop.eup %3347  ;;  %v3170_v34 = vpack.c.bf16 %v2341_v32, %v2340_v31 }
 0x755   :  { %v4697_v29 = vadd.f32 %v2069_v53, %v2068_v4 }
 0x757   :  { %3349 = vtanh.f32 %v4697_v29 }
 0x761   :  { %v3350_v15 = vpop.eup %3349 }
 0x762   :  { %v2072_v33 = vmul.f32 %v3350_v15, %v3348_v18 }
 0x764   :  { %2211 = vmatmul.mubr.f32.vlgmr.msra.gmra.mrb[14].mxu0 %v2072_v33  ;;  %2282 = vmatmul.mubr.f32.vlgmr.msra.gmra.mrb[30].mxu1 %v2072_v33 }
 0x765   :  { %3145 = vmatpush3.bf16.msra.mxu0 %v3142_v17  ;;  %2554 = vmatprep.mubr.f32.mxu0 %v4034_v48  ;;  %v2335_v48 = vld [vmem:[%s4784_s4 + $0x48] sm:$0xff] }
 0x766   :  { %3147 = vmatprep.subr.bf16.mxu0 %v3146_v20  ;;  %v3158_v25 = vpack.c.bf16 %v2335_v48, %v2334_v41 }
 0x769   :  { %3149 = vmatpush3.bf16.msra.mxu0 %v3146_v20 }
 0x76a   :  { %3151 = vmatprep.subr.bf16.mxu0 %v3150_v62 }
 0x76d   :  { %3153 = vmatpush3.bf16.msra.mxu0 %v3150_v62 }
 0x76e   :  { %3155 = vmatprep.subr.bf16.mxu0 %v3154_v16 }
 0x771   :  { %3157 = vmatpush3.bf16.msra.mxu0 %v3154_v16 }
 0x772   :  { %3159 = vmatprep.subr.bf16.mxu0 %v3158_v25 }
 0x775   :  { %3161 = vmatpush3.bf16.msra.mxu0 %v3158_v25 }
 0x776   :  { %3163 = vmatprep.subr.bf16.mxu0 %v3162_v36 }
 0x779   :  { %3165 = vmatpush3.bf16.msra.mxu0 %v3162_v36 }
 0x77a   :  { %3167 = vmatprep.subr.bf16.mxu0 %v3166_v51 }
 0x77d   :  { %3169 = vmatpush3.bf16.msra.mxu0 %v3166_v51 }
 0x77e   :  { %3171 = vmatprep.subr.bf16.mxu0 %v3170_v34 }
 0x781   :  { %3173 = vmatpush3.bf16.msra.mxu0 %v3170_v34 }
 0x784   :  { %2555 = vmatmul.mubr.f32.vlgmr.msra.gmra.mrb[16].mxu0 %v4209_v7 }
 0x785   :  { %2557 = vmatprep.mubr.f32.mxu0 %v4262_v56 }
 0x788   :  { %2558 = vmatmul.mubr.f32.gmra.mrb[18].mxu0 %v4429_v44 }
 0x789   :  { %2560 = vmatprep.mubr.f32.mxu0 %v4474_v47 }
 0x78c   :  { %2561 = vmatmul.mubr.f32.gmra.mrb[20].mxu0 %v4645_v57 }
 0x78d   :  { %2563 = vmatprep.mubr.f32.mxu0 %v2072_v33 }
 0x837   :  { %v2212_v12 = vpop.f32.mrb[14].mxu0  ;;  %v2283_v14 = vpop.f32.mrb[30].mxu1 }
 0x838   :  { %v2288_v3 = vadd.f32 %v2212_v12, %v4021_v8  ;;  %v2214_v45 = vpop.f32.mrb[15].mxu0  ;;  %v2285_v54 = vpop.f32.mrb[31].mxu1  ;;  %v3220_v44 = vadd.f32 %v2283_v14, %v4025_v27  ;;  %v2497_v27 = vld [vmem:[%s4785_s5] ss:$0 sm:$0xff] }
 0x839   :  { %v2289_v61 = vadd.f32 %v2214_v45, %v4023_v35  ;;  %v3221_v7 = vadd.f32 %v2285_v54, %v4027_v30 }
 0x83a   :  { %v2494_v10 = vmul.f32 -1.442695, %v2288_v3 }
 0x83b   :  { %v2495_v17 = vmul.f32 -1.442695, %v2289_v61  ;;  %v2496_v56 = vmul.f32 -1.442695, %v3221_v7 }
 0x83c   :  { %3351 = vpow2.f32 %v2494_v10 }
 0x83d   :  { %3353 = vpow2.f32 %v2495_v17 }
 0x83e   :  { %3355 = vpow2.f32 %v2496_v56 }
 0x83f   :  { %3357 = vtanh.f32 %v3220_v44 }
 0x846   :  { %v3352_v47 = vpop.eup %3351 }
 0x847   :  { %v3354_v57 = vpop.eup %3353  ;;  %v2295_v19 = vadd.f32 1.0, %v3352_v47 }
 0x848   :  { %v2301_v28 = vadd.f32 1.0, %v3354_v57  ;;  %v3356_v8 = vpop.eup %3355 }
 0x849   :  { %3359 = vrcp.f32 %v2295_v19  ;;  %v3358_v6 = vpop.eup %3357  ;;  %v2308_v55 = vadd.f32 1.0, %v3356_v8 }
 0x84a   :  { %3361 = vrcp.f32 %v2301_v28 }
 0x84b   :  { %3363 = vrcp.f32 %v2308_v55 }
 0x853   :  { %v3360_v35 = vpop.eup %3359 }
 0x854   :  { %v3362_v24 = vpop.eup %3361  ;;  %v2312_v38 = vmul.f32 %v3360_v35, %v3358_v6 }
 0x855   :  { %v2311_v9 = vmul.f32 %v3362_v24, %v4697_v29  ;;  %v3364_v53 = vpop.eup %3363 }
 0x857   :  { %v2556_v30 = vpop.f32.mrb[16].mxu0  ;;  %v2313_v46 = vadd.f32 %v2312_v38, %v2311_v9 }
 0x858   :  { %v2421_v39 = vadd.f32 %v2556_v30, %v2497_v27  ;;  %v2415_v13 = vpop.f32.mrb[17].mxu0 }
 0x859   :  { %v2416_v49 = vadd.f32 %v2497_v27, %v2415_v13  ;;  %3365 = vtanh.f32 %v2313_v46 }
 0x85a   :  { %2455 = vst [vmem:[%s4786_s6 + $0x8] sm:$0xff] %v2421_v39 }
 0x85b   :  { %2454 = vst [vmem:[%s4786_s6] sm:$0xff] %v2416_v49  ;;  %v2559_v37 = vpop.f32.mrb[18].mxu0 }
 0x85c   :  { %v2431_v22 = vadd.f32 %v2559_v37, %v2497_v27  ;;  %v2425_v23 = vpop.f32.mrb[19].mxu0 }
 0x85d   :  { %v2426_v21 = vadd.f32 %v2497_v27, %v2425_v23 }
 0x85e   :  { %2457 = vst [vmem:[%s4786_s6 + $0x18] sm:$0xff] %v2431_v22 }
 0x85f   :  { %2456 = vst [vmem:[%s4786_s6 + $0x10] sm:$0xff] %v2426_v21  ;;  %v2562_v2 = vpop.f32.mrb[20].mxu0 }
 0x860   :  { %v2441_v63 = vadd.f32 %v2562_v2, %v2497_v27  ;;  %v2435_v5 = vpop.f32.mrb[21].mxu0 }
 0x861   :  { %v2436_v52 = vadd.f32 %v2497_v27, %v2435_v5 }
 0x862   :  { %2459 = vst [vmem:[%s4786_s6 + $0x28] sm:$0xff] %v2441_v63 }
 0x863   :  { %v3366_v58 = vpop.eup %3365  ;;  %2458 = vst [vmem:[%s4786_s6 + $0x20] sm:$0xff] %v2436_v52 }
 0x864   :  { %v2315_v4 = vmul.f32 %v3366_v58, %v3364_v53 }
 0x866   :  { %2564 = vmatmul.mubr.f32.gmra.mrb[22].mxu0 %v2315_v4 }
 0x939   :  { %v2565_v29 = vpop.f32.mrb[22].mxu0 }
 0x93a   :  { %v2451_v0 = vadd.f32 %v2565_v29, %v2497_v27  ;;  %v2445_v26 = vpop.f32.mrb[23].mxu0 }
 0x93b   :  { %v2446_v18 = vadd.f32 %v2497_v27, %v2445_v26 }
 0x93c   :  { %2461 = vst [vmem:[%s4786_s6 + $0x38] sm:$0xff] %v2451_v0 }
 0x93d   :  { %2460 = vst [vmem:[%s4786_s6 + $0x30] sm:$0xff] %v2446_v18 }

</bundles_post_ra>
